<compile_context>
chip_gen: v6e
topology: v6e:2x2x1
jax: 0.10.0
libtpu: 0.0.40
codegen_flags: <defaults>
</compile_context>

<pallas_src>
import functools

import jax
import jax.numpy as jnp
from jax.experimental import pallas as pl
from jax.experimental.pallas import tpu as pltpu

IMG_DIM = 28 * 28      # 784
H1 = 500
H2 = 250

# Lane-padded (multiple-of-128) feature dims.
IMG_PAD = 896          # 784 -> 7*128
H1_PAD = 512
H2_PAD = 256


def _round_up(n, m):
    return (n + m - 1) // m * m


def _autoencoder_kernel(x_ref,
                        w1_ref, b1_ref, w2_ref, b2_ref, w3_ref, b3_ref,
                        w4_ref, b4_ref, w5_ref, b5_ref, w6_ref, b6_ref,
                        loss_ref, *, n_valid_rows):
    """One batch tile: 6 bf16 MXU matmuls (f32 acc) + masked partial SSE."""
    x_f32 = x_ref[...]                      # (tm, 896) f32, zero-padded cols/rows

    def linear(v_f32, w_ref, b_ref):
        # bf16 operands on the MXU, f32 accumulation, f32 bias broadcast.
        return jnp.dot(v_f32.astype(jnp.bfloat16), w_ref[...],
                       preferred_element_type=jnp.float32) + b_ref[...]

    # Encoder: Dropout(eval)=id -> Linear -> Identity (x3)
    h = linear(x_f32, w1_ref, b1_ref)
    h = linear(h, w2_ref, b2_ref)
    h = linear(h, w3_ref, b3_ref)

    # Decoder: Dropout(eval)=id -> Linear -> Identity (x2) -> Linear
    y = linear(h, w4_ref, b4_ref)
    y = linear(y, w5_ref, b5_ref)
    y = linear(y, w6_ref, b6_ref)

    # Mask batch-padding rows (padded feature columns are already exact zeros
    # in both x and y, so they contribute nothing).
    tm = x_f32.shape[0]
    row_ids = pl.program_id(0) * tm + jax.lax.broadcasted_iota(jnp.int32, (tm, 1), 0)
    row_mask = (row_ids < n_valid_rows).astype(jnp.float32)

    diff = (x_f32 - y) * row_mask
    sse = jnp.sum(diff * diff)                      # partial sum-of-squared-error
    # Lane-dense (1, 8, 128) output block; wrapper reads element [i, 0, 0].
    loss_ref[...] = jnp.full(loss_ref.shape, sse, dtype=jnp.float32)


def stack_autoencoder_loss(x_nchw, params, *, tm=128):
    """x_nchw: (B, 1, 28, 28) float32; params: dict of f32 weights/biases.

    Returns scalar MSE loss (f32), same semantics as StackAutoEncoder.forward
    (eval-mode dropout)."""
    B = x_nchw.shape[0]
    x = x_nchw.reshape(B, IMG_DIM).astype(jnp.float32)   # == tensor.view(len(x), 784)

    hid = params["w3"].shape[1]
    hid_p = _round_up(hid, 128)

    # Batch tile: multiple of 8 sublanes, no larger than the (padded) batch.
    tm = max(8, min(_round_up(tm, 8), _round_up(B, 8)))
    b_pad = _round_up(B, tm)
    grid = b_pad // tm

    # Zero-pad x to (b_pad, 896) f32.
    x_p = jnp.zeros((b_pad, IMG_PAD), jnp.float32).at[:B, :IMG_DIM].set(x)

    # Zero-pad weights (-> bf16) and biases (-> f32) to lane-aligned shapes.
    pad_dims = [(IMG_PAD, H1_PAD), (H1_PAD, H2_PAD), (H2_PAD, hid_p),
                (hid_p, H2_PAD), (H2_PAD, H1_PAD), (H1_PAD, IMG_PAD)]
    args = [x_p]
    in_specs = [pl.BlockSpec((tm, IMG_PAD), lambda i: (i, 0))]
    for idx, (rin, rout) in enumerate(pad_dims, start=1):
        w = params[f"w{idx}"]
        b = params[f"b{idx}"]
        w_p = jnp.zeros((rin, rout), jnp.bfloat16).at[
            :w.shape[0], :w.shape[1]].set(w.astype(jnp.bfloat16))
        b_p = jnp.zeros((1, rout), jnp.float32).at[
            :, :b.shape[1]].set(b.astype(jnp.float32))
        args += [w_p, b_p]
        # Constant index maps -> weights/biases stay VMEM-resident across steps.
        in_specs += [pl.BlockSpec((rin, rout), lambda i: (0, 0)),
                     pl.BlockSpec((1, rout), lambda i: (0, 0))]

    kernel = functools.partial(_autoencoder_kernel, n_valid_rows=B)

    partial_out = pl.pallas_call(
        kernel,
        out_shape=jax.ShapeDtypeStruct((grid, 8, 128), jnp.float32),
        grid_spec=pltpu.PrefetchScalarGridSpec(
            num_scalar_prefetch=0,
            grid=(grid,),
            in_specs=in_specs,
            out_specs=pl.BlockSpec((1, 8, 128), lambda i: (i, 0, 0)),
        ),
        compiler_params=pltpu.CompilerParams(
            dimension_semantics=("parallel",),
            vmem_limit_bytes=32 * 1024 * 1024,
        ),
    )(*args)

    # Sum per-tile partial SSEs; divide by the *unpadded* element count.
    sse_total = jnp.sum(partial_out[:, 0, 0])
    return sse_total / jnp.float32(B * IMG_DIM)


def init_params(key, hidden):
    """Deterministic synthetic parameters (shapes match nn.Linear layers,
    stored as (in_features, out_features))."""
    dims = [(IMG_DIM, H1), (H1, H2), (H2, hidden),   # encoder
            (hidden, H2), (H2, H1), (H1, IMG_DIM)]   # decoder
    params = {}
    keys = jax.random.split(key, len(dims))
    for i, ((fan_in, fan_out), k) in enumerate(zip(dims, keys), start=1):
        bound = 1.0 / jnp.sqrt(jnp.float32(fan_in))
        kw, kb = jax.random.split(k)
        params[f"w{i}"] = jax.random.uniform(
            kw, (fan_in, fan_out), jnp.float32, -bound, bound)
        params[f"b{i}"] = jax.random.uniform(
            kb, (1, fan_out), jnp.float32, -bound, bound)
    return params


def _reference_loss(x_nchw, params):
    """Pure-JAX reference with the same bf16-weight / f32-accumulate numerics."""
    B = x_nchw.shape[0]
    x = x_nchw.reshape(B, IMG_DIM).astype(jnp.float32)
    h = x
    for i in (1, 2, 3):
        h = jnp.dot(h.astype(jnp.bfloat16), params[f"w{i}"].astype(jnp.bfloat16),
                    preferred_element_type=jnp.float32) + params[f"b{i}"]
    y = h
    for i in (4, 5, 6):
        y = jnp.dot(y.astype(jnp.bfloat16), params[f"w{i}"].astype(jnp.bfloat16),
                    preferred_element_type=jnp.float32) + params[f"b{i}"]
    return jnp.mean((x - y) ** 2)


if __name__ == "__main__":
    hidden = 32
    batch = 20          # small demo batch; tm=8 exercises the grid + row masking

    key = jax.random.PRNGKey(0)
    k_x, k_p = jax.random.split(key)
    x = jax.random.normal(k_x, (batch, 1, 28, 28), jnp.float32)
    params = init_params(k_p, hidden)

    loss_fn = jax.jit(functools.partial(stack_autoencoder_loss, tm=8))
    loss = jax.block_until_ready(loss_fn(x, params))

    ref = _reference_loss(x, params)
    assert jnp.allclose(loss, ref, rtol=2e-3, atol=1e-4), (loss, ref)

    print("KERNEL_OK")
</pallas_src>

<mosaic_0001>
module attributes {stable_mosaic.version = 11 : i64} {
  func.func @_autoencoder_kernel(%arg0: i32, %arg1: memref<8x896xf32, #tpu.memory_space<vmem>>, %arg2: memref<896x512xbf16, #tpu.memory_space<vmem>>, %arg3: memref<1x512xf32, #tpu.memory_space<vmem>>, %arg4: memref<512x256xbf16, #tpu.memory_space<vmem>>, %arg5: memref<1x256xf32, #tpu.memory_space<vmem>>, %arg6: memref<256x128xbf16, #tpu.memory_space<vmem>>, %arg7: memref<1x128xf32, #tpu.memory_space<vmem>>, %arg8: memref<128x256xbf16, #tpu.memory_space<vmem>>, %arg9: memref<1x256xf32, #tpu.memory_space<vmem>>, %arg10: memref<256x512xbf16, #tpu.memory_space<vmem>>, %arg11: memref<1x512xf32, #tpu.memory_space<vmem>>, %arg12: memref<512x896xbf16, #tpu.memory_space<vmem>>, %arg13: memref<1x896xf32, #tpu.memory_space<vmem>>, %arg14: memref<1x8x128xf32, #tpu.memory_space<vmem>>) attributes {dimension_semantics = [#tpu.dimension_semantics<parallel>], iteration_bounds = array<i64: 3>, scalar_prefetch = 0 : i64, scratch_operands = 0 : i64, tpu.core_type = #tpu.core_type<tc>, window_params = [{transform_indices = @transform_0, window_bounds = array<i64: 8, 896>}, {pipeline_mode = #tpu.pipeline_mode<synchronous>, transform_indices = @transform_1, window_bounds = array<i64: 896, 512>}, {pipeline_mode = #tpu.pipeline_mode<synchronous>, transform_indices = @transform_2, window_bounds = array<i64: 1, 512>}, {pipeline_mode = #tpu.pipeline_mode<synchronous>, transform_indices = @transform_3, window_bounds = array<i64: 512, 256>}, {pipeline_mode = #tpu.pipeline_mode<synchronous>, transform_indices = @transform_4, window_bounds = array<i64: 1, 256>}, {pipeline_mode = #tpu.pipeline_mode<synchronous>, transform_indices = @transform_5, window_bounds = array<i64: 256, 128>}, {pipeline_mode = #tpu.pipeline_mode<synchronous>, transform_indices = @transform_6, window_bounds = array<i64: 1, 128>}, {pipeline_mode = #tpu.pipeline_mode<synchronous>, transform_indices = @transform_7, window_bounds = array<i64: 128, 256>}, {pipeline_mode = #tpu.pipeline_mode<synchronous>, transform_indices = @transform_8, window_bounds = array<i64: 1, 256>}, {pipeline_mode = #tpu.pipeline_mode<synchronous>, transform_indices = @transform_9, window_bounds = array<i64: 256, 512>}, {pipeline_mode = #tpu.pipeline_mode<synchronous>, transform_indices = @transform_10, window_bounds = array<i64: 1, 512>}, {pipeline_mode = #tpu.pipeline_mode<synchronous>, transform_indices = @transform_11, window_bounds = array<i64: 512, 896>}, {pipeline_mode = #tpu.pipeline_mode<synchronous>, transform_indices = @transform_12, window_bounds = array<i64: 1, 896>}, {transform_indices = @transform_13, window_bounds = array<i64: 1, 8, 128>}]} {
    %c0 = arith.constant 0 : index
    %c0_0 = arith.constant 0 : index
    %0 = vector.load %arg1[%c0, %c0_0] : memref<8x896xf32, #tpu.memory_space<vmem>>, vector<8x896xf32>
    %1 = arith.truncf %0 : vector<8x896xf32> to vector<8x896xbf16>
    %c0_1 = arith.constant 0 : index
    %c0_2 = arith.constant 0 : index
    %2 = vector.load %arg2[%c0_1, %c0_2] : memref<896x512xbf16, #tpu.memory_space<vmem>>, vector<896x512xbf16>
    %cst = arith.constant dense<0.000000e+00> : vector<8x512xf32>
    %3 = tpu.matmul %1, %2, %cst {dimension_numbers = #tpu.dot_dimension_numbers<[1], [0], [0], [1], [0, 0, 1, 1], [], []>} : vector<8x896xbf16>, vector<896x512xbf16>, vector<8x512xf32> -> vector<8x512xf32>
    %c0_3 = arith.constant 0 : index
    %c0_4 = arith.constant 0 : index
    %4 = vector.load %arg3[%c0_3, %c0_4] : memref<1x512xf32, #tpu.memory_space<vmem>>, vector<1x512xf32>
    %5 = vector.broadcast %4 : vector<1x512xf32> to vector<8x512xf32>
    %6 = arith.addf %3, %5 : vector<8x512xf32>
    %7 = arith.truncf %6 : vector<8x512xf32> to vector<8x512xbf16>
    %c0_5 = arith.constant 0 : index
    %c0_6 = arith.constant 0 : index
    %8 = vector.load %arg4[%c0_5, %c0_6] : memref<512x256xbf16, #tpu.memory_space<vmem>>, vector<512x256xbf16>
    %cst_7 = arith.constant dense<0.000000e+00> : vector<8x256xf32>
    %9 = tpu.matmul %7, %8, %cst_7 {dimension_numbers = #tpu.dot_dimension_numbers<[1], [0], [0], [1], [0, 0, 1, 1], [], []>} : vector<8x512xbf16>, vector<512x256xbf16>, vector<8x256xf32> -> vector<8x256xf32>
    %c0_8 = arith.constant 0 : index
    %c0_9 = arith.constant 0 : index
    %10 = vector.load %arg5[%c0_8, %c0_9] : memref<1x256xf32, #tpu.memory_space<vmem>>, vector<1x256xf32>
    %11 = vector.broadcast %10 : vector<1x256xf32> to vector<8x256xf32>
    %12 = arith.addf %9, %11 : vector<8x256xf32>
    %13 = arith.truncf %12 : vector<8x256xf32> to vector<8x256xbf16>
    %c0_10 = arith.constant 0 : index
    %c0_11 = arith.constant 0 : index
    %14 = vector.load %arg6[%c0_10, %c0_11] : memref<256x128xbf16, #tpu.memory_space<vmem>>, vector<256x128xbf16>
    %cst_12 = arith.constant dense<0.000000e+00> : vector<8x128xf32>
    %15 = tpu.matmul %13, %14, %cst_12 {dimension_numbers = #tpu.dot_dimension_numbers<[1], [0], [0], [1], [0, 0, 1, 1], [], []>} : vector<8x256xbf16>, vector<256x128xbf16>, vector<8x128xf32> -> vector<8x128xf32>
    %c0_13 = arith.constant 0 : index
    %c0_14 = arith.constant 0 : index
    %16 = vector.load %arg7[%c0_13, %c0_14] : memref<1x128xf32, #tpu.memory_space<vmem>>, vector<1x128xf32>
    %17 = vector.broadcast %16 : vector<1x128xf32> to vector<8x128xf32>
    %18 = arith.addf %15, %17 : vector<8x128xf32>
    %19 = arith.truncf %18 : vector<8x128xf32> to vector<8x128xbf16>
    %c0_15 = arith.constant 0 : index
    %c0_16 = arith.constant 0 : index
    %20 = vector.load %arg8[%c0_15, %c0_16] : memref<128x256xbf16, #tpu.memory_space<vmem>>, vector<128x256xbf16>
    %cst_17 = arith.constant dense<0.000000e+00> : vector<8x256xf32>
    %21 = tpu.matmul %19, %20, %cst_17 {dimension_numbers = #tpu.dot_dimension_numbers<[1], [0], [0], [1], [0, 0, 1, 1], [], []>} : vector<8x128xbf16>, vector<128x256xbf16>, vector<8x256xf32> -> vector<8x256xf32>
    %c0_18 = arith.constant 0 : index
    %c0_19 = arith.constant 0 : index
    %22 = vector.load %arg9[%c0_18, %c0_19] : memref<1x256xf32, #tpu.memory_space<vmem>>, vector<1x256xf32>
    %23 = vector.broadcast %22 : vector<1x256xf32> to vector<8x256xf32>
    %24 = arith.addf %21, %23 : vector<8x256xf32>
    %25 = arith.truncf %24 : vector<8x256xf32> to vector<8x256xbf16>
    %c0_20 = arith.constant 0 : index
    %c0_21 = arith.constant 0 : index
    %26 = vector.load %arg10[%c0_20, %c0_21] : memref<256x512xbf16, #tpu.memory_space<vmem>>, vector<256x512xbf16>
    %cst_22 = arith.constant dense<0.000000e+00> : vector<8x512xf32>
    %27 = tpu.matmul %25, %26, %cst_22 {dimension_numbers = #tpu.dot_dimension_numbers<[1], [0], [0], [1], [0, 0, 1, 1], [], []>} : vector<8x256xbf16>, vector<256x512xbf16>, vector<8x512xf32> -> vector<8x512xf32>
    %c0_23 = arith.constant 0 : index
    %c0_24 = arith.constant 0 : index
    %28 = vector.load %arg11[%c0_23, %c0_24] : memref<1x512xf32, #tpu.memory_space<vmem>>, vector<1x512xf32>
    %29 = vector.broadcast %28 : vector<1x512xf32> to vector<8x512xf32>
    %30 = arith.addf %27, %29 : vector<8x512xf32>
    %31 = arith.truncf %30 : vector<8x512xf32> to vector<8x512xbf16>
    %c0_25 = arith.constant 0 : index
    %c0_26 = arith.constant 0 : index
    %32 = vector.load %arg12[%c0_25, %c0_26] : memref<512x896xbf16, #tpu.memory_space<vmem>>, vector<512x896xbf16>
    %cst_27 = arith.constant dense<0.000000e+00> : vector<8x896xf32>
    %33 = tpu.matmul %31, %32, %cst_27 {dimension_numbers = #tpu.dot_dimension_numbers<[1], [0], [0], [1], [0, 0, 1, 1], [], []>} : vector<8x512xbf16>, vector<512x896xbf16>, vector<8x896xf32> -> vector<8x896xf32>
    %c0_28 = arith.constant 0 : index
    %c0_29 = arith.constant 0 : index
    %34 = vector.load %arg13[%c0_28, %c0_29] : memref<1x896xf32, #tpu.memory_space<vmem>>, vector<1x896xf32>
    %35 = vector.broadcast %34 : vector<1x896xf32> to vector<8x896xf32>
    %36 = arith.addf %33, %35 : vector<8x896xf32>
    %c8_i32 = arith.constant 8 : i32
    %37 = arith.muli %arg0, %c8_i32 : i32
    %38 = tpu.iota {dimensions = array<i32: 0>} : vector<8x1xi32>
    %39 = vector.broadcast %37 : i32 to vector<8x1xi32>
    %40 = arith.addi %39, %38 : vector<8x1xi32>
    %c20_i32 = arith.constant 20 : i32
    %41 = vector.broadcast %c20_i32 : i32 to vector<8x1xi32>
    %42 = arith.cmpi slt, %40, %41 : vector<8x1xi32>
    %43 = arith.extui %42 : vector<8x1xi1> to vector<8x1xi32>
    %44 = arith.sitofp %43 : vector<8x1xi32> to vector<8x1xf32>
    %45 = arith.subf %0, %36 : vector<8x896xf32>
    %46 = vector.broadcast %44 : vector<8x1xf32> to vector<8x896xf32>
    %47 = arith.mulf %45, %46 : vector<8x896xf32>
    %48 = arith.mulf %47, %47 : vector<8x896xf32>
    %49 = vector.shape_cast %48 : vector<8x896xf32> to vector<1x8x896xf32>
    %cst_30 = arith.constant dense<0.000000e+00> : vector<1xf32>
    %50 = vector.multi_reduction <add>, %49, %cst_30 [1, 2] : vector<1x8x896xf32> to vector<1xf32>
    %51 = vector.shape_cast %50 : vector<1xf32> to vector<1x1x1xf32>
    %52 = vector.extract %51[0, 0, 0] : f32 from vector<1x1x1xf32>
    %53 = vector.broadcast %52 : f32 to vector<1x8x128xf32>
    %c0_31 = arith.constant 0 : index
    %c0_32 = arith.constant 0 : index
    %c0_33 = arith.constant 0 : index
    %54 = vector.load %arg14[%c0_31, %c0_32, %c0_33] : memref<1x8x128xf32, #tpu.memory_space<vmem>>, vector<1x8x128xf32>
    tpu.vector_store %arg14[%c0_31, %c0_32, %c0_33], %53 {strides = array<i32>} : memref<1x8x128xf32, #tpu.memory_space<vmem>>, vector<1x8x128xf32>,
    return
  }
  func.func @transform_0(%arg0: i32) -> (i32, i32) {
    %c0_i32 = arith.constant 0 : i32
    %c0_i32_0 = arith.constant 0 : i32
    return %arg0, %c0_i32 : i32, i32
  }
  func.func @transform_1(%arg0: i32) -> (i32, i32) {
    %c0_i32 = arith.constant 0 : i32
    %c0_i32_0 = arith.constant 0 : i32
    %c0_i32_1 = arith.constant 0 : i32
    return %c0_i32, %c0_i32_0 : i32, i32
  }
  func.func @transform_2(%arg0: i32) -> (i32, i32) {
    %c0_i32 = arith.constant 0 : i32
    %c0_i32_0 = arith.constant 0 : i32
    %c0_i32_1 = arith.constant 0 : i32
    return %c0_i32, %c0_i32_0 : i32, i32
  }
  func.func @transform_3(%arg0: i32) -> (i32, i32) {
    %c0_i32 = arith.constant 0 : i32
    %c0_i32_0 = arith.constant 0 : i32
    %c0_i32_1 = arith.constant 0 : i32
    return %c0_i32, %c0_i32_0 : i32, i32
  }
  func.func @transform_4(%arg0: i32) -> (i32, i32) {
    %c0_i32 = arith.constant 0 : i32
    %c0_i32_0 = arith.constant 0 : i32
    %c0_i32_1 = arith.constant 0 : i32
    return %c0_i32, %c0_i32_0 : i32, i32
  }
  func.func @transform_5(%arg0: i32) -> (i32, i32) {
    %c0_i32 = arith.constant 0 : i32
    %c0_i32_0 = arith.constant 0 : i32
    %c0_i32_1 = arith.constant 0 : i32
    return %c0_i32, %c0_i32_0 : i32, i32
  }
  func.func @transform_6(%arg0: i32) -> (i32, i32) {
    %c0_i32 = arith.constant 0 : i32
    %c0_i32_0 = arith.constant 0 : i32
    %c0_i32_1 = arith.constant 0 : i32
    return %c0_i32, %c0_i32_0 : i32, i32
  }
  func.func @transform_7(%arg0: i32) -> (i32, i32) {
    %c0_i32 = arith.constant 0 : i32
    %c0_i32_0 = arith.constant 0 : i32
    %c0_i32_1 = arith.constant 0 : i32
    return %c0_i32, %c0_i32_0 : i32, i32
  }
  func.func @transform_8(%arg0: i32) -> (i32, i32) {
    %c0_i32 = arith.constant 0 : i32
    %c0_i32_0 = arith.constant 0 : i32
    %c0_i32_1 = arith.constant 0 : i32
    return %c0_i32, %c0_i32_0 : i32, i32
  }
  func.func @transform_9(%arg0: i32) -> (i32, i32) {
    %c0_i32 = arith.constant 0 : i32
    %c0_i32_0 = arith.constant 0 : i32
    %c0_i32_1 = arith.constant 0 : i32
    return %c0_i32, %c0_i32_0 : i32, i32
  }
  func.func @transform_10(%arg0: i32) -> (i32, i32) {
    %c0_i32 = arith.constant 0 : i32
    %c0_i32_0 = arith.constant 0 : i32
    %c0_i32_1 = arith.constant 0 : i32
    return %c0_i32, %c0_i32_0 : i32, i32
  }
  func.func @transform_11(%arg0: i32) -> (i32, i32) {
    %c0_i32 = arith.constant 0 : i32
    %c0_i32_0 = arith.constant 0 : i32
    %c0_i32_1 = arith.constant 0 : i32
    return %c0_i32, %c0_i32_0 : i32, i32
  }
  func.func @transform_12(%arg0: i32) -> (i32, i32) {
    %c0_i32 = arith.constant 0 : i32
    %c0_i32_0 = arith.constant 0 : i32
    %c0_i32_1 = arith.constant 0 : i32
    return %c0_i32, %c0_i32_0 : i32, i32
  }
  func.func @transform_13(%arg0: i32) -> (i32, i32, i32) {
    %c0_i32 = arith.constant 0 : i32
    %c0_i32_0 = arith.constant 0 : i32
    %c0_i32_1 = arith.constant 0 : i32
    return %arg0, %c0_i32, %c0_i32_0 : i32, i32, i32
  }
}

</mosaic_0001>

<bundles_post_ra>
// kernel: stack_autoencoder_loss.1
= control target key start
LH: loop header
LB: loop body
LE: loop exit
PB: predicated region body
PF: predicated region fallthrough
CT: control target
= control target key end

     0   :  { %s6995_s25 = smov 0   ;;  %s8998_s0 = inlined_call_operand.vmem [shape: f32[24,896], index: 0, kind: input, shape index: {}]   ;;  %s8999_s1 = inlined_call_operand.vmem [shape: bf16[896,512], index: 1, kind: input, shape index: {}]   ;;  %s9000_s2 = inlined_call_operand.vmem [shape: f32[1,512], index: 2, kind: input, shape index: {}]   ;;  %s9001_s3 = inlined_call_operand.vmem [shape: bf16[512,256], index: 3, kind: input, shape index: {}]   ;;  %s9002_s4 = inlined_call_operand.vmem [shape: f32[1,256], index: 4, kind: input, shape index: {}]   ;;  %s9003_s5 = inlined_call_operand.vmem [shape: bf16[256,128], index: 5, kind: input, shape index: {}]   ;;  %s9004_s6 = inlined_call_operand.vmem [shape: f32[1,128], index: 6, kind: input, shape index: {}]   ;;  %s9005_s7 = inlined_call_operand.vmem [shape: bf16[128,256], index: 7, kind: input, shape index: {}]   ;;  %s9006_s8 = inlined_call_operand.vmem [shape: f32[1,256], index: 8, kind: input, shape index: {}]   ;;  %s9007_s9 = inlined_call_operand.vmem [shape: bf16[256,512], index: 9, kind: input, shape index: {}]   ;;  %s9008_s10 = inlined_call_operand.vmem [shape: f32[1,512], index: 10, kind: input, shape index: {}]   ;;  %s9009_s11 = inlined_call_operand.vmem [shape: bf16[512,896], index: 11, kind: input, shape index: {}]   ;;  %s9010_s12 = inlined_call_operand.vmem [shape: f32[1,896], index: 12, kind: input, shape index: {}]   ;;  %s9011_s13 = inlined_call_operand.vmem [shape: f32[3,8,128], index: 13, kind: output, shape index: {}]  }
   0x1 LB: > { %s7001_s26 = sadd.s32 4294967295, %s6921_s25   ;;  %p5325_p0 = scmp.ge.s32.totalorder %s6921_s25, 1  ;;  %s6921_s25 = sphi %s6995_s25, %s23_s25  }
   0x2   : > { %p387_p1 = scmp.lt.s32.totalorder %s6921_s25, 4 }
   0x4   : > { %p388_p2 = pnand %p5325_p0, %p387_p1 }
   0x5   : > { %p430_p3 = scmp.lt.s32.totalorder (!%p388_p2), %s7001_s26, 2  ;;  %s5937_s21 = sshll.u32 (!%p388_p2), %s7001_s26, 3 }
   0x6   : > { %391 = sbr.rel (%p388_p2) target bundleno = 1811 (0x713), region = 72 }
   0xb   : > { %v6020_v0 = vld [vmem:[%s8999_s1 + $0xe4] ss:$16 sps:$4 sm:$0xff]   ;;  %v6024_v2 = vld [vmem:[%s8999_s1 + $0xe0] ss:$16 sps:$4 sm:$0xff]   ;;  %s7115_s22 = scalar_select %p430_p3, %s7001_s26, 2 }
   0xc   : > { %v6022_v1 = vld [vmem:[%s8999_s1 + $0x2e4] ss:$16 sps:$4 sm:$0xff]   ;;  %1820 = vmatprep.subr.bf16.mxu0 %v6020_v0  ;;  %v6025_v3 = vld [vmem:[%s8999_s1 + $0x2e0] ss:$16 sps:$4 sm:$0xff]  }
   0xd   : > { %1861 = vmatprep.subr.bf16.mxu1 %v6022_v1  ;;  %v6026_v4 = vld [vmem:[%s8999_s1 + $0xc4] ss:$16 sps:$4 sm:$0xff]   ;;  %1821 = vmatpush1.bf16.msra.mxu0 %v6024_v2  ;;  %v6030_v6 = vld [vmem:[%s8999_s1 + $0xc0] ss:$16 sps:$4 sm:$0xff]   ;;  %s6007_s14 = smul.u32 56, %s7115_s22  ;;  %s5327_s26 = sshll.u32 %s7115_s22, 3 }
   0xe   : > { %1862 = vmatpush1.bf16.msra.mxu1 %v6025_v3  ;;  %v6028_v5 = vld [vmem:[%s8999_s1 + $0x2c4] ss:$16 sps:$4 sm:$0xff]   ;;  %1822 = vmatprep.subr.bf16.mxu0 %v6026_v4  ;;  %v6031_v7 = vld [vmem:[%s8999_s1 + $0x2c0] ss:$16 sps:$4 sm:$0xff]   ;;  %s438_s28 = scalar_lea.vmem %s9011_s13, %s5327_s26 }
   0xf   : > { %1863 = vmatprep.subr.bf16.mxu1 %v6028_v5  ;;  %v6032_v8 = vld [vmem:[%s8999_s1 + $0xa4] ss:$16 sps:$4 sm:$0xff]   ;;  %v6036_v10 = vld [vmem:[%s8999_s1 + $0xa0] ss:$16 sps:$4 sm:$0xff]   ;;  %s7145_s30 = scalar_lea.vmem %s8998_s0, %s6007_s14 }
  0x10   : > { %v6034_v9 = vld [vmem:[%s8999_s1 + $0x2a4] ss:$16 sps:$4 sm:$0xff]   ;;  %v6037_v11 = vld [vmem:[%s8999_s1 + $0x2a0] ss:$16 sps:$4 sm:$0xff]   ;;  %v441_v46 = vld [vmem:[%s7145_s30 + $0x8] sm:$0xff] }
  0x11   : > { %1823 = vmatpush1.bf16.msra.mxu0 %v6030_v6  ;;  %v6038_v12 = vld [vmem:[%s8999_s1 + $0x84] ss:$16 sps:$4 sm:$0xff]   ;;  %v6042_v14 = vld [vmem:[%s8999_s1 + $0x80] ss:$16 sps:$4 sm:$0xff]   ;;  %v7160_v49 = vpack.c.bf16 %v441_v46, %v441_v46  ;;  %v443_v50 = vld [vmem:[%s7145_s30 + $0x18] sm:$0xff] }
  0x12   : > { %1864 = vmatpush1.bf16.msra.mxu1 %v6031_v7  ;;  %1824 = vmatprep.subr.bf16.mxu0 %v6032_v8  ;;  %v6040_v13 = vld [vmem:[%s8999_s1 + $0x284] ss:$16 sps:$4 sm:$0xff]   ;;  %v6043_v15 = vld [vmem:[%s8999_s1 + $0x280] ss:$16 sps:$4 sm:$0xff]   ;;  %v7166_v52 = vpack.c.bf16 %v443_v50, %v443_v50 }
  0x13   : > { %1865 = vmatprep.subr.bf16.mxu1 %v6034_v9  ;;  %v6044_v16 = vld [vmem:[%s8999_s1 + $0x64] ss:$16 sps:$4 sm:$0xff]   ;;  %v6048_v18 = vld [vmem:[%s8999_s1 + $0x60] ss:$16 sps:$4 sm:$0xff]   ;;  %1852 = vmatprep.mubr.bf16.mxu0 %v7160_v49 }
  0x14   : > { %v6046_v17 = vld [vmem:[%s8999_s1 + $0x264] ss:$16 sps:$4 sm:$0xff]   ;;  %v6049_v19 = vld [vmem:[%s8999_s1 + $0x260] ss:$16 sps:$4 sm:$0xff]   ;;  %1893 = vmatprep.mubr.bf16.mxu1 %v7166_v52 }
  0x15   : > { %1825 = vmatpush1.bf16.msra.mxu0 %v6036_v10  ;;  %v6050_v20 = vld [vmem:[%s8999_s1 + $0x44] ss:$16 sps:$4 sm:$0xff]   ;;  %v6054_v22 = vld [vmem:[%s8999_s1 + $0x40] ss:$16 sps:$4 sm:$0xff]  }
  0x16   : > { %1866 = vmatpush1.bf16.msra.mxu1 %v6037_v11  ;;  %1826 = vmatprep.subr.bf16.mxu0 %v6038_v12  ;;  %v6052_v21 = vld [vmem:[%s8999_s1 + $0x244] ss:$16 sps:$4 sm:$0xff]   ;;  %v6055_v23 = vld [vmem:[%s8999_s1 + $0x240] ss:$16 sps:$4 sm:$0xff]  }
  0x17   : > { %1867 = vmatprep.subr.bf16.mxu1 %v6040_v13  ;;  %v6056_v24 = vld [vmem:[%s8999_s1 + $0x24] ss:$16 sps:$4 sm:$0xff]   ;;  %v6060_v26 = vld [vmem:[%s8999_s1 + $0x20] ss:$16 sps:$4 sm:$0xff]  }
  0x18   : > { %v6058_v25 = vld [vmem:[%s8999_s1 + $0x224] ss:$16 sps:$4 sm:$0xff]   ;;  %v6061_v27 = vld [vmem:[%s8999_s1 + $0x220] ss:$16 sps:$4 sm:$0xff]  }
  0x19   : > { %1827 = vmatpush1.bf16.msra.mxu0 %v6042_v14  ;;  %v6062_v28 = vld [vmem:[%s8999_s1 + $0x4] ss:$16 sps:$4 sm:$0xff]   ;;  %v6066_v30 = vld [vmem:[%s8999_s1] ss:$16 sps:$4 sm:$0xff]  }
  0x1a   : > { %1868 = vmatpush1.bf16.msra.mxu1 %v6043_v15  ;;  %1828 = vmatprep.subr.bf16.mxu0 %v6044_v16  ;;  %v6064_v29 = vld [vmem:[%s8999_s1 + $0x204] ss:$16 sps:$4 sm:$0xff]   ;;  %v6067_v31 = vld [vmem:[%s8999_s1 + $0x200] ss:$16 sps:$4 sm:$0xff]  }
  0x1b   : > { %1869 = vmatprep.subr.bf16.mxu1 %v6046_v17  ;;  %v6068_v32 = vld [vmem:[%s8999_s1 + $0x1e4] ss:$16 sps:$4 sm:$0xff]   ;;  %v6072_v34 = vld [vmem:[%s8999_s1 + $0x1e0] ss:$16 sps:$4 sm:$0xff]  }
  0x1c   : > { %v6070_v33 = vld [vmem:[%s8999_s1 + $0x3e4] ss:$16 sps:$4 sm:$0xff]   ;;  %v6073_v35 = vld [vmem:[%s8999_s1 + $0x3e0] ss:$16 sps:$4 sm:$0xff]  }
  0x1d   : > { %1829 = vmatpush1.bf16.msra.mxu0 %v6048_v18  ;;  %v6074_v36 = vld [vmem:[%s8999_s1 + $0x1c4] ss:$16 sps:$4 sm:$0xff]   ;;  %v6078_v38 = vld [vmem:[%s8999_s1 + $0x1c0] ss:$16 sps:$4 sm:$0xff]   ;;  %v6923_v18 = vmov 0  }
  0x1e   : > { %1870 = vmatpush1.bf16.msra.mxu1 %v6049_v19  ;;  %1830 = vmatprep.subr.bf16.mxu0 %v6050_v20  ;;  %v6076_v37 = vld [vmem:[%s8999_s1 + $0x3c4] ss:$16 sps:$4 sm:$0xff]   ;;  %v6079_v39 = vld [vmem:[%s8999_s1 + $0x3c0] ss:$16 sps:$4 sm:$0xff]  }
  0x1f   : > { %1871 = vmatprep.subr.bf16.mxu1 %v6052_v21  ;;  %v6080_v40 = vld [vmem:[%s8999_s1 + $0x1a4] ss:$16 sps:$4 sm:$0xff]   ;;  %v6084_v42 = vld [vmem:[%s8999_s1 + $0x1a0] ss:$16 sps:$4 sm:$0xff]  }
  0x20   : > { %v6082_v41 = vld [vmem:[%s8999_s1 + $0x3a4] ss:$16 sps:$4 sm:$0xff]   ;;  %v6085_v43 = vld [vmem:[%s8999_s1 + $0x3a0] ss:$16 sps:$4 sm:$0xff]  }
  0x21   : > { %1831 = vmatpush1.bf16.msra.mxu0 %v6054_v22  ;;  %v6086_v44 = vld [vmem:[%s8999_s1 + $0x184] ss:$16 sps:$4 sm:$0xff]   ;;  %v6090_v47 = vld [vmem:[%s8999_s1 + $0x180] ss:$16 sps:$4 sm:$0xff]  }
  0x22   : > { %1872 = vmatpush1.bf16.msra.mxu1 %v6055_v23  ;;  %1832 = vmatprep.subr.bf16.mxu0 %v6056_v24  ;;  %v6088_v45 = vld [vmem:[%s8999_s1 + $0x384] ss:$16 sps:$4 sm:$0xff]   ;;  %v6091_v48 = vld [vmem:[%s8999_s1 + $0x380] ss:$16 sps:$4 sm:$0xff]  }
  0x23   : > { %1873 = vmatprep.subr.bf16.mxu1 %v6058_v25  ;;  %v6092_v51 = vld [vmem:[%s8999_s1 + $0x164] ss:$16 sps:$4 sm:$0xff]   ;;  %v6096_v54 = vld [vmem:[%s8999_s1 + $0x160] ss:$16 sps:$4 sm:$0xff]  }
  0x24   : > { %v6094_v53 = vld [vmem:[%s8999_s1 + $0x364] ss:$16 sps:$4 sm:$0xff]   ;;  %v6097_v55 = vld [vmem:[%s8999_s1 + $0x360] ss:$16 sps:$4 sm:$0xff]  }
  0x25   : > { %1833 = vmatpush1.bf16.msra.mxu0 %v6060_v26  ;;  %v6098_v56 = vld [vmem:[%s8999_s1 + $0x144] ss:$16 sps:$4 sm:$0xff]   ;;  %v6102_v58 = vld [vmem:[%s8999_s1 + $0x140] ss:$16 sps:$4 sm:$0xff]  }
  0x26   : > { %1874 = vmatpush1.bf16.msra.mxu1 %v6061_v27  ;;  %1834 = vmatprep.subr.bf16.mxu0 %v6062_v28  ;;  %v6100_v57 = vld [vmem:[%s8999_s1 + $0x344] ss:$16 sps:$4 sm:$0xff]   ;;  %v6103_v59 = vld [vmem:[%s8999_s1 + $0x340] ss:$16 sps:$4 sm:$0xff]  }
  0x27   : > { %1875 = vmatprep.subr.bf16.mxu1 %v6064_v29  ;;  %v6104_v60 = vld [vmem:[%s8999_s1 + $0x124] ss:$16 sps:$4 sm:$0xff]   ;;  %v6108_v62 = vld [vmem:[%s8999_s1 + $0x120] ss:$16 sps:$4 sm:$0xff]  }
  0x28   : > { %v6106_v61 = vld [vmem:[%s8999_s1 + $0x324] ss:$16 sps:$4 sm:$0xff]   ;;  %v6109_v63 = vld [vmem:[%s8999_s1 + $0x320] ss:$16 sps:$4 sm:$0xff]  }
  0x29   : > { %1835 = vmatpush1.bf16.msra.mxu0 %v6066_v30  ;;  %v6110_v0 = vld [vmem:[%s8999_s1 + $0x104] ss:$16 sps:$4 sm:$0xff]   ;;  %v6114_v2 = vld [vmem:[%s8999_s1 + $0x100] ss:$16 sps:$4 sm:$0xff]  }
  0x2a   : > { %1876 = vmatpush1.bf16.msra.mxu1 %v6067_v31  ;;  %1836 = vmatprep.subr.bf16.mxu0 %v6068_v32  ;;  %v6112_v1 = vld [vmem:[%s8999_s1 + $0x304] ss:$16 sps:$4 sm:$0xff]   ;;  %v6115_v3 = vld [vmem:[%s8999_s1 + $0x300] ss:$16 sps:$4 sm:$0xff]  }
  0x2b   : > { %1877 = vmatprep.subr.bf16.mxu1 %v6070_v33  ;;  %v440_v4 = vld [vmem:[%s7145_s30] sm:$0xff]  ;;  %v442_v5 = vld [vmem:[%s7145_s30 + $0x10] sm:$0xff] }
  0x2c   : > { %v6118_v6 = vld [vmem:[%s8999_s1 + $0x4e4] ss:$16 sps:$4 sm:$0xff]   ;;  %v7223_v8 = vpack.c.bf16 %v440_v4, %v440_v4  ;;  %v7225_v9 = vpack.c.bf16 %v442_v5, %v442_v5  ;;  %v6116_v10 = vld [vmem:[%s8999_s1 + $0x4e0] ss:$16 sps:$4 sm:$0xff]   ;;  %v6197_v5 = vld [vmem:[%s8999_s1 + $0x48] ss:$16 sps:$4 sm:$0xff]  }
  0x2d   : > { %1837 = vmatpush2.bf16.msra.mxu0 %v6072_v34  ;;  %v6121_v7 = vld [vmem:[%s8999_s1 + $0x6e4] ss:$16 sps:$4 sm:$0xff]   ;;  %v6119_v11 = vld [vmem:[%s8999_s1 + $0x6e0] ss:$16 sps:$4 sm:$0xff]  }
  0x2e   : > { %1878 = vmatpush2.bf16.msra.mxu1 %v6073_v35  ;;  %1838 = vmatprep.subr.bf16.mxu0 %v6074_v36  ;;  %v6124_v12 = vld [vmem:[%s8999_s1 + $0x4c4] ss:$16 sps:$4 sm:$0xff]   ;;  %v6122_v14 = vld [vmem:[%s8999_s1 + $0x4c0] ss:$16 sps:$4 sm:$0xff]   ;;  %v445_v36 = vld [vmem:[%s7145_s30 + $0x28] sm:$0xff] }
  0x2f   : > { %1879 = vmatprep.subr.bf16.mxu1 %v6076_v37  ;;  %v6127_v13 = vld [vmem:[%s8999_s1 + $0x6c4] ss:$16 sps:$4 sm:$0xff]   ;;  %v6125_v15 = vld [vmem:[%s8999_s1 + $0x6c0] ss:$16 sps:$4 sm:$0xff]  }
  0x30   : > { %v6130_v16 = vld [vmem:[%s8999_s1 + $0x4a4] ss:$16 sps:$4 sm:$0xff]   ;;  %v6128_v19 = vld [vmem:[%s8999_s1 + $0x4a0] ss:$16 sps:$4 sm:$0xff]  }
  0x31   : > { %1839 = vmatpush2.bf16.msra.mxu0 %v6078_v38  ;;  %v6133_v17 = vld [vmem:[%s8999_s1 + $0x6a4] ss:$16 sps:$4 sm:$0xff]   ;;  %v6131_v20 = vld [vmem:[%s8999_s1 + $0x6a0] ss:$16 sps:$4 sm:$0xff]  }
  0x32   : > { %1880 = vmatpush2.bf16.msra.mxu1 %v6079_v39  ;;  %1840 = vmatprep.subr.bf16.mxu0 %v6080_v40  ;;  %v6136_v21 = vld [vmem:[%s8999_s1 + $0x484] ss:$16 sps:$4 sm:$0xff]   ;;  %v6134_v23 = vld [vmem:[%s8999_s1 + $0x480] ss:$16 sps:$4 sm:$0xff]   ;;  %v7312_v39 = vpack.c.bf16 %v445_v36, %v445_v36  ;;  %v6236_v36 = vld [vmem:[%s8999_s1 + $0x168] ss:$16 sps:$4 sm:$0xff]  }
  0x33   : > { %1881 = vmatprep.subr.bf16.mxu1 %v6082_v41  ;;  %v6139_v22 = vld [vmem:[%s8999_s1 + $0x684] ss:$16 sps:$4 sm:$0xff]   ;;  %v6137_v24 = vld [vmem:[%s8999_s1 + $0x680] ss:$16 sps:$4 sm:$0xff]  }
  0x34   : > { %v6142_v25 = vld [vmem:[%s8999_s1 + $0x464] ss:$16 sps:$4 sm:$0xff]   ;;  %v6140_v27 = vld [vmem:[%s8999_s1 + $0x460] ss:$16 sps:$4 sm:$0xff]  }
  0x35   : > { %1841 = vmatpush2.bf16.msra.mxu0 %v6084_v42  ;;  %v6145_v26 = vld [vmem:[%s8999_s1 + $0x664] ss:$16 sps:$4 sm:$0xff]   ;;  %v6143_v28 = vld [vmem:[%s8999_s1 + $0x660] ss:$16 sps:$4 sm:$0xff]  }
  0x36   : > { %1882 = vmatpush2.bf16.msra.mxu1 %v6085_v43  ;;  %1842 = vmatprep.subr.bf16.mxu0 %v6086_v44  ;;  %v6148_v29 = vld [vmem:[%s8999_s1 + $0x444] ss:$16 sps:$4 sm:$0xff]   ;;  %v6146_v31 = vld [vmem:[%s8999_s1 + $0x440] ss:$16 sps:$4 sm:$0xff]  }
  0x37   : > { %1883 = vmatprep.subr.bf16.mxu1 %v6088_v45  ;;  %v6151_v30 = vld [vmem:[%s8999_s1 + $0x644] ss:$16 sps:$4 sm:$0xff]   ;;  %v6149_v32 = vld [vmem:[%s8999_s1 + $0x640] ss:$16 sps:$4 sm:$0xff]   ;;  %v6169_v45 = vld [vmem:[%s8999_s1 + $0xec] ss:$16 sps:$4 sm:$0xff]  }
  0x38   : > { %v6154_v33 = vld [vmem:[%s8999_s1 + $0x424] ss:$16 sps:$4 sm:$0xff]   ;;  %v6152_v35 = vld [vmem:[%s8999_s1 + $0x420] ss:$16 sps:$4 sm:$0xff]  }
  0x39   : > { %1843 = vmatpush2.bf16.msra.mxu0 %v6090_v47  ;;  %v6157_v34 = vld [vmem:[%s8999_s1 + $0x624] ss:$16 sps:$4 sm:$0xff]   ;;  %v6155_v37 = vld [vmem:[%s8999_s1 + $0x620] ss:$16 sps:$4 sm:$0xff]  }
  0x3a   : > { %1884 = vmatpush2.bf16.msra.mxu1 %v6091_v48  ;;  %1844 = vmatprep.subr.bf16.mxu0 %v6092_v51  ;;  %v6160_v38 = vld [vmem:[%s8999_s1 + $0x404] ss:$16 sps:$4 sm:$0xff]   ;;  %v6158_v41 = vld [vmem:[%s8999_s1 + $0x400] ss:$16 sps:$4 sm:$0xff]   ;;  %v6167_v48 = vld [vmem:[%s8999_s1 + $0xe8] ss:$16 sps:$4 sm:$0xff]  }
  0x3b   : > { %1885 = vmatprep.subr.bf16.mxu1 %v6094_v53  ;;  %v6163_v40 = vld [vmem:[%s8999_s1 + $0x604] ss:$16 sps:$4 sm:$0xff]   ;;  %v6161_v42 = vld [vmem:[%s8999_s1 + $0x600] ss:$16 sps:$4 sm:$0xff]   ;;  %v6175_v51 = vld [vmem:[%s8999_s1 + $0xcc] ss:$16 sps:$4 sm:$0xff]  }
  0x3c   : > { %v6166_v43 = vld [vmem:[%s8999_s1 + $0x5e4] ss:$16 sps:$4 sm:$0xff]   ;;  %v6164_v46 = vld [vmem:[%s8999_s1 + $0x5e0] ss:$16 sps:$4 sm:$0xff]  }
  0x3d   : > { %1845 = vmatpush2.bf16.msra.mxu0 %v6096_v54  ;;  %v446_v44 = vld [vmem:[%s7145_s30 + $0x30] sm:$0xff]  ;;  %v6173_v54 = vld [vmem:[%s8999_s1 + $0xc8] ss:$16 sps:$4 sm:$0xff]  }
  0x3e   : > { %1886 = vmatpush2.bf16.msra.mxu1 %v6097_v55  ;;  %1846 = vmatprep.subr.bf16.mxu0 %v6098_v56  ;;  %v7334_v47 = vpack.c.bf16 %v446_v44, %v446_v44  ;;  %v6172_v50 = vld [vmem:[%s8999_s1 + $0x5c4] ss:$16 sps:$4 sm:$0xff]   ;;  %v6170_v53 = vld [vmem:[%s8999_s1 + $0x5c0] ss:$16 sps:$4 sm:$0xff]   ;;  %v6181_v56 = vld [vmem:[%s8999_s1 + $0xac] ss:$16 sps:$4 sm:$0xff]  }
  0x3f   : > { %1887 = vmatprep.subr.bf16.mxu1 %v6100_v57  ;;  %v6178_v55 = vld [vmem:[%s8999_s1 + $0x5a4] ss:$16 sps:$4 sm:$0xff]   ;;  %v6176_v57 = vld [vmem:[%s8999_s1 + $0x5a0] ss:$16 sps:$4 sm:$0xff]   ;;  %v6253_v44 = vld [vmem:[%s8999_s1 + $0x22c] ss:$16 sps:$4 sm:$0xff]  }
  0x40   : > { %v6194_v4 = vld [vmem:[%s8999_s1 + $0x540] ss:$16 sps:$4 sm:$0xff]  }
  0x41   : > { %1847 = vmatpush2.bf16.msra.mxu0 %v6102_v58  ;;  %v6179_v58 = vld [vmem:[%s8999_s1 + $0xa8] ss:$16 sps:$4 sm:$0xff]  }
  0x42   : > { %1888 = vmatpush2.bf16.msra.mxu1 %v6103_v59  ;;  %1848 = vmatprep.subr.bf16.mxu0 %v6104_v60  ;;  %v6184_v59 = vld [vmem:[%s8999_s1 + $0x584] ss:$16 sps:$4 sm:$0xff]   ;;  %v6182_v60 = vld [vmem:[%s8999_s1 + $0x580] ss:$16 sps:$4 sm:$0xff]  }
  0x43   : > { %1889 = vmatprep.subr.bf16.mxu1 %v6106_v61  ;;  %v6185_v61 = vld [vmem:[%s8999_s1 + $0x88] ss:$16 sps:$4 sm:$0xff]  }
  0x45   : > { %1849 = vmatpush2.bf16.msra.mxu0 %v6108_v62  ;;  %v6190_v62 = vld [vmem:[%s8999_s1 + $0x564] ss:$16 sps:$4 sm:$0xff]  }
  0x46   : > { %1890 = vmatpush2.bf16.msra.mxu1 %v6109_v63  ;;  %1850 = vmatprep.subr.bf16.mxu0 %v6110_v0  ;;  %v6193_v63 = vld [vmem:[%s8999_s1 + $0x6c] ss:$16 sps:$4 sm:$0xff]   ;;  %v6188_v0 = vld [vmem:[%s8999_s1 + $0x560] ss:$16 sps:$4 sm:$0xff]  }
  0x47   : > { %1891 = vmatprep.subr.bf16.mxu1 %v6112_v1  ;;  %v6191_v1 = vld [vmem:[%s8999_s1 + $0x68] ss:$16 sps:$4 sm:$0xff]  }
  0x49   : > { %1851 = vmatpush2.bf16.msra.mxu0 %v6114_v2  ;;  %v6196_v2 = vld [vmem:[%s8999_s1 + $0x544] ss:$16 sps:$4 sm:$0xff]  }
  0x4a   : > { %1892 = vmatpush2.bf16.msra.mxu1 %v6115_v3  ;;  %1902 = vmatprep.subr.bf16.mxu0 %v6118_v6  ;;  %v6199_v3 = vld [vmem:[%s8999_s1 + $0x4c] ss:$16 sps:$4 sm:$0xff]   ;;  %v6202_v6 = vld [vmem:[%s8999_s1 + $0x524] ss:$16 sps:$4 sm:$0xff]  }
  0x4b   : > { %1943 = vmatprep.subr.bf16.mxu1 %v6121_v7  ;;  %v6205_v7 = vld [vmem:[%s8999_s1 + $0x2c] ss:$16 sps:$4 sm:$0xff]  }
  0x4c   : > { %1853 = vmatmul.mubr.bf16.vlgmr.msra.gmra.mxu0 %v7223_v8 }
  0x4d   : > { %1894 = vmatmul.mubr.bf16.vlgmr.msra.gmra.mxu1 %v7225_v9  ;;  %1903 = vmatpush1.bf16.msra.mxu0 %v6116_v10  ;;  %v6200_v10 = vld [vmem:[%s8999_s1 + $0x520] ss:$16 sps:$4 sm:$0xff]  }
  0x4e   : > { %1944 = vmatpush1.bf16.msra.mxu1 %v6119_v11  ;;  %1904 = vmatprep.subr.bf16.mxu0 %v6124_v12  ;;  %v6203_v11 = vld [vmem:[%s8999_s1 + $0x28] ss:$16 sps:$4 sm:$0xff]   ;;  %v6208_v12 = vld [vmem:[%s8999_s1 + $0x504] ss:$16 sps:$4 sm:$0xff]  }
  0x4f   : > { %1945 = vmatprep.subr.bf16.mxu1 %v6127_v13  ;;  %1975 = vmatprep.mubr.bf16.mxu1 %v6923_v18  ;;  %v6211_v13 = vld [vmem:[%s8999_s1 + $0xc] ss:$16 sps:$4 sm:$0xff]  }
  0x50   : > { %1934 = vmatprep.mubr.bf16.mxu0 %v7312_v39 }
  0x51   : > { %1905 = vmatpush1.bf16.msra.mxu0 %v6122_v14  ;;  %v6206_v14 = vld [vmem:[%s8999_s1 + $0x500] ss:$16 sps:$4 sm:$0xff]  }
  0x52   : > { %1946 = vmatpush1.bf16.msra.mxu1 %v6125_v15  ;;  %1906 = vmatprep.subr.bf16.mxu0 %v6130_v16  ;;  %v6209_v15 = vld [vmem:[%s8999_s1 + $0x8] ss:$16 sps:$4 sm:$0xff]   ;;  %v444_v16 = vld [vmem:[%s7145_s30 + $0x20] sm:$0xff] }
  0x53   : > { %1947 = vmatprep.subr.bf16.mxu1 %v6133_v17  ;;  %v6214_v17 = vld [vmem:[%s8999_s1 + $0x1ec] ss:$16 sps:$4 sm:$0xff]  }
  0x55   : > { %1907 = vmatpush1.bf16.msra.mxu0 %v6128_v19  ;;  %v6217_v19 = vld [vmem:[%s8999_s1 + $0x2ec] ss:$16 sps:$4 sm:$0xff]  }
  0x56   : > { %1948 = vmatpush1.bf16.msra.mxu1 %v6131_v20  ;;  %1908 = vmatprep.subr.bf16.mxu0 %v6136_v21  ;;  %v7432_v20 = vpack.c.bf16 %v444_v16, %v444_v16  ;;  %v6212_v21 = vld [vmem:[%s8999_s1 + $0x1e8] ss:$16 sps:$4 sm:$0xff]  }
  0x57   : > { %1949 = vmatprep.subr.bf16.mxu1 %v6139_v22  ;;  %v6215_v22 = vld [vmem:[%s8999_s1 + $0x2e8] ss:$16 sps:$4 sm:$0xff]  }
  0x58   : > { %v6299_v16 = vld [vmem:[%s8999_s1 + $0x428] ss:$16 sps:$4 sm:$0xff]  }
  0x59   : > { %1909 = vmatpush1.bf16.msra.mxu0 %v6134_v23  ;;  %v6220_v23 = vld [vmem:[%s8999_s1 + $0x1cc] ss:$16 sps:$4 sm:$0xff]  }
  0x5a   : > { %1950 = vmatpush1.bf16.msra.mxu1 %v6137_v24  ;;  %1910 = vmatprep.subr.bf16.mxu0 %v6142_v25  ;;  %v6223_v24 = vld [vmem:[%s8999_s1 + $0x2cc] ss:$16 sps:$4 sm:$0xff]   ;;  %v6218_v25 = vld [vmem:[%s8999_s1 + $0x1c8] ss:$16 sps:$4 sm:$0xff]  }
  0x5b   : > { %1951 = vmatprep.subr.bf16.mxu1 %v6145_v26  ;;  %v6221_v26 = vld [vmem:[%s8999_s1 + $0x2c8] ss:$16 sps:$4 sm:$0xff]  }
  0x5d   : > { %1911 = vmatpush1.bf16.msra.mxu0 %v6140_v27  ;;  %v6226_v27 = vld [vmem:[%s8999_s1 + $0x1ac] ss:$16 sps:$4 sm:$0xff]  }
  0x5e   : > { %1952 = vmatpush1.bf16.msra.mxu1 %v6143_v28  ;;  %1912 = vmatprep.subr.bf16.mxu0 %v6148_v29  ;;  %v6229_v28 = vld [vmem:[%s8999_s1 + $0x2ac] ss:$16 sps:$4 sm:$0xff]   ;;  %v6224_v29 = vld [vmem:[%s8999_s1 + $0x1a8] ss:$16 sps:$4 sm:$0xff]  }
  0x5f   : > { %1953 = vmatprep.subr.bf16.mxu1 %v6151_v30  ;;  %v6227_v30 = vld [vmem:[%s8999_s1 + $0x2a8] ss:$16 sps:$4 sm:$0xff]  }
  0x61   : > { %1913 = vmatpush1.bf16.msra.mxu0 %v6146_v31  ;;  %v6232_v31 = vld [vmem:[%s8999_s1 + $0x18c] ss:$16 sps:$4 sm:$0xff]  }
  0x62   : > { %1954 = vmatpush1.bf16.msra.mxu1 %v6149_v32  ;;  %1914 = vmatprep.subr.bf16.mxu0 %v6154_v33  ;;  %v6230_v32 = vld [vmem:[%s8999_s1 + $0x188] ss:$16 sps:$4 sm:$0xff]  }
  0x63   : > { %1955 = vmatprep.subr.bf16.mxu1 %v6157_v34  ;;  %v6233_v33 = vld [vmem:[%s8999_s1 + $0x288] ss:$16 sps:$4 sm:$0xff]   ;;  %v6238_v34 = vld [vmem:[%s8999_s1 + $0x16c] ss:$16 sps:$4 sm:$0xff]  }
  0x65   : > { %1915 = vmatpush1.bf16.msra.mxu0 %v6152_v35  ;;  %v6241_v35 = vld [vmem:[%s8999_s1 + $0x26c] ss:$16 sps:$4 sm:$0xff]  }
  0x66   : > { %1956 = vmatpush1.bf16.msra.mxu1 %v6155_v37  ;;  %1916 = vmatprep.subr.bf16.mxu0 %v6160_v38  ;;  %v6239_v37 = vld [vmem:[%s8999_s1 + $0x268] ss:$16 sps:$4 sm:$0xff]   ;;  %v6244_v38 = vld [vmem:[%s8999_s1 + $0x14c] ss:$16 sps:$4 sm:$0xff]  }
  0x67   : > { %1957 = vmatprep.subr.bf16.mxu1 %v6163_v40  ;;  %v6247_v40 = vld [vmem:[%s8999_s1 + $0x24c] ss:$16 sps:$4 sm:$0xff]  }
  0x69   : > { %1917 = vmatpush1.bf16.msra.mxu0 %v6158_v41  ;;  %v6242_v41 = vld [vmem:[%s8999_s1 + $0x148] ss:$16 sps:$4 sm:$0xff]  }
  0x6a   : > { %1958 = vmatpush1.bf16.msra.mxu1 %v6161_v42  ;;  %1918 = vmatprep.subr.bf16.mxu0 %v6166_v43  ;;  %v6245_v42 = vld [vmem:[%s8999_s1 + $0x248] ss:$16 sps:$4 sm:$0xff]   ;;  %v6250_v43 = vld [vmem:[%s8999_s1 + $0x12c] ss:$16 sps:$4 sm:$0xff]  }
  0x6b   : > { %1984 = vmatprep.subr.bf16.mxu1 %v6169_v45  ;;  %v6248_v45 = vld [vmem:[%s8999_s1 + $0x128] ss:$16 sps:$4 sm:$0xff]  }
  0x6d   : > { %1976 = vmatmul.mubr.bf16.vlgmr.msra.gmra.mxu1 %v7334_v47  ;;  %1919 = vmatpush2.bf16.msra.mxu0 %v6164_v46  ;;  %v6251_v46 = vld [vmem:[%s8999_s1 + $0x228] ss:$16 sps:$4 sm:$0xff]  }
  0x6e   : > { %1985 = vmatpush1.bf16.msra.mxu1 %v6167_v48  ;;  %1920 = vmatprep.subr.bf16.mxu0 %v6172_v50  ;;  %v6256_v48 = vld [vmem:[%s8999_s1 + $0x10c] ss:$16 sps:$4 sm:$0xff]  }
  0x6f   : > { %1986 = vmatprep.subr.bf16.mxu1 %v6175_v51  ;;  %2016 = vmatprep.mubr.bf16.mxu1 %v7160_v49  ;;  %v6187_v49 = vld [vmem:[%s8999_s1 + $0x8c] ss:$16 sps:$4 sm:$0xff]   ;;  %v6254_v51 = vld [vmem:[%s8999_s1 + $0x108] ss:$16 sps:$4 sm:$0xff]  }
  0x70   : > { %v6259_v50 = vld [vmem:[%s8999_s1 + $0x20c] ss:$16 sps:$4 sm:$0xff]  }
  0x71   : > { %1921 = vmatpush2.bf16.msra.mxu0 %v6170_v53  ;;  %v6257_v53 = vld [vmem:[%s8999_s1 + $0x208] ss:$16 sps:$4 sm:$0xff]  }
  0x72   : > { %1987 = vmatpush1.bf16.msra.mxu1 %v6173_v54  ;;  %1922 = vmatprep.subr.bf16.mxu0 %v6178_v55  ;;  %v6262_v54 = vld [vmem:[%s8999_s1 + $0x3ec] ss:$16 sps:$4 sm:$0xff]  }
  0x73   : > { %1988 = vmatprep.subr.bf16.mxu1 %v6181_v56  ;;  %v6265_v55 = vld [vmem:[%s8999_s1 + $0x4ec] ss:$16 sps:$4 sm:$0xff]   ;;  %v6260_v56 = vld [vmem:[%s8999_s1 + $0x3e8] ss:$16 sps:$4 sm:$0xff]  }
  0x75   : > { %1923 = vmatpush2.bf16.msra.mxu0 %v6176_v57  ;;  %v6263_v57 = vld [vmem:[%s8999_s1 + $0x4e8] ss:$16 sps:$4 sm:$0xff]  }
  0x76   : > { %1989 = vmatpush1.bf16.msra.mxu1 %v6179_v58  ;;  %1924 = vmatprep.subr.bf16.mxu0 %v6184_v59  ;;  %v6268_v58 = vld [vmem:[%s8999_s1 + $0x3cc] ss:$16 sps:$4 sm:$0xff]  }
  0x77   : > { %1990 = vmatprep.subr.bf16.mxu1 %v6187_v49  ;;  %v6271_v59 = vld [vmem:[%s8999_s1 + $0x4cc] ss:$16 sps:$4 sm:$0xff]   ;;  %v6266_v49 = vld [vmem:[%s8999_s1 + $0x3c8] ss:$16 sps:$4 sm:$0xff]  }
  0x79   : > { %1925 = vmatpush2.bf16.msra.mxu0 %v6182_v60  ;;  %v6269_v60 = vld [vmem:[%s8999_s1 + $0x4c8] ss:$16 sps:$4 sm:$0xff]  }
  0x7a   : > { %1991 = vmatpush1.bf16.msra.mxu1 %v6185_v61  ;;  %1926 = vmatprep.subr.bf16.mxu0 %v6190_v62  ;;  %v6274_v61 = vld [vmem:[%s8999_s1 + $0x3ac] ss:$16 sps:$4 sm:$0xff]  }
  0x7b   : > { %1992 = vmatprep.subr.bf16.mxu1 %v6193_v63  ;;  %v6277_v62 = vld [vmem:[%s8999_s1 + $0x4ac] ss:$16 sps:$4 sm:$0xff]   ;;  %v6272_v63 = vld [vmem:[%s8999_s1 + $0x3a8] ss:$16 sps:$4 sm:$0xff]  }
  0x7d   : > { %1927 = vmatpush2.bf16.msra.mxu0 %v6188_v0  ;;  %v6280_v0 = vld [vmem:[%s8999_s1 + $0x38c] ss:$16 sps:$4 sm:$0xff]  }
  0x7e   : > { %1993 = vmatpush1.bf16.msra.mxu1 %v6191_v1  ;;  %1928 = vmatprep.subr.bf16.mxu0 %v6196_v2  ;;  %v6278_v1 = vld [vmem:[%s8999_s1 + $0x388] ss:$16 sps:$4 sm:$0xff]  }
  0x7f   : > { %1994 = vmatprep.subr.bf16.mxu1 %v6199_v3  ;;  %v6281_v2 = vld [vmem:[%s8999_s1 + $0x488] ss:$16 sps:$4 sm:$0xff]   ;;  %v6286_v3 = vld [vmem:[%s8999_s1 + $0x36c] ss:$16 sps:$4 sm:$0xff]  }
  0x81   : > { %1929 = vmatpush2.bf16.msra.mxu0 %v6194_v4  ;;  %v6289_v4 = vld [vmem:[%s8999_s1 + $0x46c] ss:$16 sps:$4 sm:$0xff]  }
  0x82   : > { %1995 = vmatpush1.bf16.msra.mxu1 %v6197_v5  ;;  %1930 = vmatprep.subr.bf16.mxu0 %v6202_v6  ;;  %v6284_v5 = vld [vmem:[%s8999_s1 + $0x368] ss:$16 sps:$4 sm:$0xff]  }
  0x83   : > { %1996 = vmatprep.subr.bf16.mxu1 %v6205_v7  ;;  %v6287_v6 = vld [vmem:[%s8999_s1 + $0x468] ss:$16 sps:$4 sm:$0xff]   ;;  %v6292_v7 = vld [vmem:[%s8999_s1 + $0x34c] ss:$16 sps:$4 sm:$0xff]  }
  0x85   : > { %1931 = vmatpush2.bf16.msra.mxu0 %v6200_v10  ;;  %v6295_v10 = vld [vmem:[%s8999_s1 + $0x44c] ss:$16 sps:$4 sm:$0xff]  }
  0x86   : > { %1997 = vmatpush1.bf16.msra.mxu1 %v6203_v11  ;;  %1932 = vmatprep.subr.bf16.mxu0 %v6208_v12  ;;  %v6290_v11 = vld [vmem:[%s8999_s1 + $0x348] ss:$16 sps:$4 sm:$0xff]  }
  0x87   : > { %1998 = vmatprep.subr.bf16.mxu1 %v6211_v13  ;;  %v6293_v12 = vld [vmem:[%s8999_s1 + $0x448] ss:$16 sps:$4 sm:$0xff]   ;;  %v6298_v13 = vld [vmem:[%s8999_s1 + $0x32c] ss:$16 sps:$4 sm:$0xff]  }
  0x89   : > { %1933 = vmatpush2.bf16.msra.mxu0 %v6206_v14  ;;  %v6301_v14 = vld [vmem:[%s8999_s1 + $0x42c] ss:$16 sps:$4 sm:$0xff]  }
  0x8a   : > { %1999 = vmatpush1.bf16.msra.mxu1 %v6209_v15  ;;  %2025 = vmatprep.subr.bf16.mxu0 %v6217_v19  ;;  %v6296_v15 = vld [vmem:[%s8999_s1 + $0x328] ss:$16 sps:$4 sm:$0xff]   ;;  %v6307_v19 = vld [vmem:[%s8999_s1 + $0x40c] ss:$16 sps:$4 sm:$0xff]  }
  0x8b   : > { %2000 = vmatprep.subr.bf16.mxu1 %v6214_v17  ;;  %v6304_v17 = vld [vmem:[%s8999_s1 + $0x30c] ss:$16 sps:$4 sm:$0xff]  }
  0x8c   : > { %1935 = vmatmul.mubr.bf16.vlgmr.msra.gmra.mxu0 %v7432_v20 }
  0x8d   : > { %2026 = vmatpush1.bf16.msra.mxu0 %v6215_v22  ;;  %2057 = vmatprep.mubr.bf16.mxu0 %v7166_v52  ;;  %v6235_v52 = vld [vmem:[%s8999_s1 + $0x28c] ss:$16 sps:$4 sm:$0xff]   ;;  %v6305_v22 = vld [vmem:[%s8999_s1 + $0x408] ss:$16 sps:$4 sm:$0xff]  }
  0x8e   : > { %2001 = vmatpush2.bf16.msra.mxu1 %v6212_v21  ;;  %2027 = vmatprep.subr.bf16.mxu0 %v6223_v24  ;;  %v6302_v21 = vld [vmem:[%s8999_s1 + $0x308] ss:$16 sps:$4 sm:$0xff]   ;;  %v6313_v24 = vld [vmem:[%s8999_s1 + $0x6ec] ss:$16 sps:$4 sm:$0xff]  }
  0x8f   : > { %2002 = vmatprep.subr.bf16.mxu1 %v6220_v23  ;;  %v6310_v23 = vld [vmem:[%s8999_s1 + $0x5ec] ss:$16 sps:$4 sm:$0xff]  }
  0x91   : > { %2028 = vmatpush1.bf16.msra.mxu0 %v6221_v26  ;;  %v6311_v26 = vld [vmem:[%s8999_s1 + $0x6e8] ss:$16 sps:$4 sm:$0xff]  }
  0x92   : > { %2003 = vmatpush2.bf16.msra.mxu1 %v6218_v25  ;;  %2029 = vmatprep.subr.bf16.mxu0 %v6229_v28  ;;  %v6308_v25 = vld [vmem:[%s8999_s1 + $0x5e8] ss:$16 sps:$4 sm:$0xff]   ;;  %v6319_v28 = vld [vmem:[%s8999_s1 + $0x6cc] ss:$16 sps:$4 sm:$0xff]  }
  0x93   : > { %2004 = vmatprep.subr.bf16.mxu1 %v6226_v27  ;;  %v6316_v27 = vld [vmem:[%s8999_s1 + $0x5cc] ss:$16 sps:$4 sm:$0xff]  }
  0x95   : > { %2030 = vmatpush1.bf16.msra.mxu0 %v6227_v30  ;;  %v6317_v30 = vld [vmem:[%s8999_s1 + $0x6c8] ss:$16 sps:$4 sm:$0xff]  }
  0x96   : > { %2005 = vmatpush2.bf16.msra.mxu1 %v6224_v29  ;;  %2031 = vmatprep.subr.bf16.mxu0 %v6235_v52  ;;  %v6314_v29 = vld [vmem:[%s8999_s1 + $0x5c8] ss:$16 sps:$4 sm:$0xff]   ;;  %v6325_v52 = vld [vmem:[%s8999_s1 + $0x6ac] ss:$16 sps:$4 sm:$0xff]  }
  0x97   : > { %2006 = vmatprep.subr.bf16.mxu1 %v6232_v31  ;;  %v6322_v31 = vld [vmem:[%s8999_s1 + $0x5ac] ss:$16 sps:$4 sm:$0xff]  }
  0x99   : > { %2032 = vmatpush1.bf16.msra.mxu0 %v6233_v33  ;;  %v6328_v33 = vld [vmem:[%s8999_s1 + $0x58c] ss:$16 sps:$4 sm:$0xff]  }
  0x9a   : > { %2007 = vmatpush2.bf16.msra.mxu1 %v6230_v32  ;;  %2033 = vmatprep.subr.bf16.mxu0 %v6241_v35  ;;  %v6320_v32 = vld [vmem:[%s8999_s1 + $0x5a8] ss:$16 sps:$4 sm:$0xff]  }
  0x9b   : > { %2008 = vmatprep.subr.bf16.mxu1 %v6238_v34  ;;  %v6331_v34 = vld [vmem:[%s8999_s1 + $0x68c] ss:$16 sps:$4 sm:$0xff]   ;;  %v6326_v35 = vld [vmem:[%s8999_s1 + $0x588] ss:$16 sps:$4 sm:$0xff]  }
  0x9d   : > { %2034 = vmatpush1.bf16.msra.mxu0 %v6239_v37  ;;  %v6334_v37 = vld [vmem:[%s8999_s1 + $0x56c] ss:$16 sps:$4 sm:$0xff]  }
  0x9e   : > { %2009 = vmatpush2.bf16.msra.mxu1 %v6236_v36  ;;  %2035 = vmatprep.subr.bf16.mxu0 %v6247_v40  ;;  %v6329_v36 = vld [vmem:[%s8999_s1 + $0x688] ss:$16 sps:$4 sm:$0xff]  }
  0x9f   : > { %2010 = vmatprep.subr.bf16.mxu1 %v6244_v38  ;;  %v6337_v38 = vld [vmem:[%s8999_s1 + $0x66c] ss:$16 sps:$4 sm:$0xff]   ;;  %v6332_v40 = vld [vmem:[%s8999_s1 + $0x568] ss:$16 sps:$4 sm:$0xff]  }
  0xa1   : > { %2036 = vmatpush1.bf16.msra.mxu0 %v6245_v42  ;;  %v6340_v42 = vld [vmem:[%s8999_s1 + $0x54c] ss:$16 sps:$4 sm:$0xff]  }
  0xa2   : > { %2011 = vmatpush2.bf16.msra.mxu1 %v6242_v41  ;;  %2037 = vmatprep.subr.bf16.mxu0 %v6253_v44  ;;  %v6335_v41 = vld [vmem:[%s8999_s1 + $0x668] ss:$16 sps:$4 sm:$0xff]  }
  0xa3   : > { %2012 = vmatprep.subr.bf16.mxu1 %v6250_v43  ;;  %v6343_v43 = vld [vmem:[%s8999_s1 + $0x64c] ss:$16 sps:$4 sm:$0xff]   ;;  %v6338_v44 = vld [vmem:[%s8999_s1 + $0x548] ss:$16 sps:$4 sm:$0xff]  }
  0xa5   : > { %2038 = vmatpush1.bf16.msra.mxu0 %v6251_v46  ;;  %v6346_v46 = vld [vmem:[%s8999_s1 + $0x52c] ss:$16 sps:$4 sm:$0xff]  }
  0xa6   : > { %2013 = vmatpush2.bf16.msra.mxu1 %v6248_v45  ;;  %2039 = vmatprep.subr.bf16.mxu0 %v6259_v50  ;;  %v6341_v45 = vld [vmem:[%s8999_s1 + $0x648] ss:$16 sps:$4 sm:$0xff]  }
  0xa7   : > { %2014 = vmatprep.subr.bf16.mxu1 %v6256_v48  ;;  %v6349_v48 = vld [vmem:[%s8999_s1 + $0x62c] ss:$16 sps:$4 sm:$0xff]   ;;  %v6344_v50 = vld [vmem:[%s8999_s1 + $0x528] ss:$16 sps:$4 sm:$0xff]  }
  0xa9   : > { %2040 = vmatpush1.bf16.msra.mxu0 %v6257_v53  ;;  %v6352_v53 = vld [vmem:[%s8999_s1 + $0x50c] ss:$16 sps:$4 sm:$0xff]  }
  0xaa   : > { %2015 = vmatpush2.bf16.msra.mxu1 %v6254_v51  ;;  %2041 = vmatprep.subr.bf16.mxu0 %v6262_v54  ;;  %v6347_v51 = vld [vmem:[%s8999_s1 + $0x628] ss:$16 sps:$4 sm:$0xff]   ;;  %v6355_v54 = vld [vmem:[%s8999_s1 + $0x60c] ss:$16 sps:$4 sm:$0xff]  }
  0xab   : > { %2066 = vmatprep.subr.bf16.mxu1 %v6265_v55  ;;  %v6350_v55 = vld [vmem:[%s8999_s1 + $0x508] ss:$16 sps:$4 sm:$0xff]  }
  0xad   : > { %2017 = vmatmul.mubr.bf16.vlgmr.msra.gmra.mxu1 %v7223_v8  ;;  %2042 = vmatpush2.bf16.msra.mxu0 %v6260_v56  ;;  %v6275_v8 = vld [vmem:[%s8999_s1 + $0x4a8] ss:$16 sps:$4 sm:$0xff]  }
  0xae   : > { %2067 = vmatpush1.bf16.msra.mxu1 %v6263_v57  ;;  %2043 = vmatprep.subr.bf16.mxu0 %v6268_v58  ;;  %v6353_v56 = vld [vmem:[%s8999_s1 + $0x608] ss:$16 sps:$4 sm:$0xff]   ;;  %v6358_v57 = vld [vmem:[%s9001_s3 + $0x74] ss:$8 sps:$4 sm:$0xff]  }
  0xaf   : > { %2068 = vmatprep.subr.bf16.mxu1 %v6271_v59  ;;  %2098 = vmatprep.mubr.bf16.mxu1 %v7312_v39  ;;  %v6283_v39 = vld [vmem:[%s8999_s1 + $0x48c] ss:$16 sps:$4 sm:$0xff]   ;;  %v6356_v58 = vld [vmem:[%s9001_s3 + $0x70] ss:$8 sps:$4 sm:$0xff]  }
  0xb0   : > { %v6361_v59 = vld [vmem:[%s9001_s3 + $0x64] ss:$8 sps:$4 sm:$0xff]  }
  0xb1   : > { %2044 = vmatpush2.bf16.msra.mxu0 %v6266_v49  ;;  %v6359_v49 = vld [vmem:[%s9001_s3 + $0x60] ss:$8 sps:$4 sm:$0xff]  }
  0xb2   : > { %2069 = vmatpush1.bf16.msra.mxu1 %v6269_v60  ;;  %2045 = vmatprep.subr.bf16.mxu0 %v6274_v61  ;;  %v6364_v60 = vld [vmem:[%s9001_s3 + $0x54] ss:$8 sps:$4 sm:$0xff]   ;;  %v6362_v61 = vld [vmem:[%s9001_s3 + $0x50] ss:$8 sps:$4 sm:$0xff]  }
  0xb3   : > { %2070 = vmatprep.subr.bf16.mxu1 %v6277_v62  ;;  %v6367_v62 = vld [vmem:[%s9001_s3 + $0x44] ss:$8 sps:$4 sm:$0xff]  }
  0xb5   : > { %2046 = vmatpush2.bf16.msra.mxu0 %v6272_v63  ;;  %v6409_v63 = vld [vmem:[%s9001_s3 + $0x164] ss:$8 sps:$4 sm:$0xff]  }
  0xb6   : > { %2071 = vmatpush1.bf16.msra.mxu1 %v6275_v8  ;;  %2047 = vmatprep.subr.bf16.mxu0 %v6280_v0  ;;  %v6365_v8 = vld [vmem:[%s9001_s3 + $0x40] ss:$8 sps:$4 sm:$0xff]   ;;  %v6370_v0 = vld [vmem:[%s9001_s3 + $0x34] ss:$8 sps:$4 sm:$0xff]  }
  0xb7   : > { %2072 = vmatprep.subr.bf16.mxu1 %v6283_v39  ;;  %v6407_v39 = vld [vmem:[%s9001_s3 + $0x160] ss:$8 sps:$4 sm:$0xff]  }
  0xb9   : > { %2048 = vmatpush2.bf16.msra.mxu0 %v6278_v1  ;;  %v6412_v1 = vld [vmem:[%s9001_s3 + $0x154] ss:$8 sps:$4 sm:$0xff]  }
  0xba   : > { %2073 = vmatpush1.bf16.msra.mxu1 %v6281_v2  ;;  %2049 = vmatprep.subr.bf16.mxu0 %v6286_v3  ;;  %v6368_v2 = vld [vmem:[%s9001_s3 + $0x30] ss:$8 sps:$4 sm:$0xff]  }
  0xbb   : > { %2074 = vmatprep.subr.bf16.mxu1 %v6289_v4  ;;  %v6410_v3 = vld [vmem:[%s9001_s3 + $0x150] ss:$8 sps:$4 sm:$0xff]   ;;  %v6373_v4 = vld [vmem:[%s9001_s3 + $0x24] ss:$8 sps:$4 sm:$0xff]  }
  0xbd   : > { %2050 = vmatpush2.bf16.msra.mxu0 %v6284_v5  ;;  %v6415_v5 = vld [vmem:[%s9001_s3 + $0x144] ss:$8 sps:$4 sm:$0xff]  }
  0xbe   : > { %2075 = vmatpush1.bf16.msra.mxu1 %v6287_v6  ;;  %2051 = vmatprep.subr.bf16.mxu0 %v6292_v7  ;;  %v6371_v6 = vld [vmem:[%s9001_s3 + $0x20] ss:$8 sps:$4 sm:$0xff]  }
  0xbf   : > { %2076 = vmatprep.subr.bf16.mxu1 %v6295_v10  ;;  %v6413_v7 = vld [vmem:[%s9001_s3 + $0x140] ss:$8 sps:$4 sm:$0xff]   ;;  %v6376_v10 = vld [vmem:[%s9001_s3 + $0x14] ss:$8 sps:$4 sm:$0xff]  }
  0xc1   : > { %2052 = vmatpush2.bf16.msra.mxu0 %v6290_v11  ;;  %v6418_v11 = vld [vmem:[%s9001_s3 + $0x134] ss:$8 sps:$4 sm:$0xff]  }
  0xc2   : > { %2077 = vmatpush1.bf16.msra.mxu1 %v6293_v12  ;;  %2053 = vmatprep.subr.bf16.mxu0 %v6298_v13  ;;  %v6374_v12 = vld [vmem:[%s9001_s3 + $0x10] ss:$8 sps:$4 sm:$0xff]  }
  0xc3   : > { %2078 = vmatprep.subr.bf16.mxu1 %v6301_v14  ;;  %v6416_v13 = vld [vmem:[%s9001_s3 + $0x130] ss:$8 sps:$4 sm:$0xff]   ;;  %v6379_v14 = vld [vmem:[%s9001_s3 + $0x4] ss:$8 sps:$4 sm:$0xff]  }
  0xc5   : > { %2054 = vmatpush2.bf16.msra.mxu0 %v6296_v15  ;;  %v6421_v15 = vld [vmem:[%s9001_s3 + $0x124] ss:$8 sps:$4 sm:$0xff]  }
  0xc6   : > { %2079 = vmatpush1.bf16.msra.mxu1 %v6299_v16  ;;  %2055 = vmatprep.subr.bf16.mxu0 %v6304_v17  ;;  %v6377_v16 = vld [vmem:[%s9001_s3] ss:$8 sps:$4 sm:$0xff]  }
  0xc7   : > { %2080 = vmatprep.subr.bf16.mxu1 %v6307_v19  ;;  %v6419_v17 = vld [vmem:[%s9001_s3 + $0x120] ss:$8 sps:$4 sm:$0xff]   ;;  %v6382_v19 = vld [vmem:[%s9001_s3 + $0xf4] ss:$8 sps:$4 sm:$0xff]  }
  0xc9   : > { %2056 = vmatpush2.bf16.msra.mxu0 %v6302_v21  ;;  %v6380_v21 = vld [vmem:[%s9001_s3 + $0xf0] ss:$8 sps:$4 sm:$0xff]  }
  0xca   : > { %2081 = vmatpush1.bf16.msra.mxu1 %v6305_v22  ;;  %2107 = vmatprep.subr.bf16.mxu0 %v6313_v24  ;;  %v6385_v22 = vld [vmem:[%s9001_s3 + $0xe4] ss:$8 sps:$4 sm:$0xff]  }
  0xcb   : > { %2082 = vmatprep.subr.bf16.mxu1 %v6310_v23  ;;  %v6383_v23 = vld [vmem:[%s9001_s3 + $0xe0] ss:$8 sps:$4 sm:$0xff]  }
  0xcc   : > { %2058 = vmatmul.mubr.bf16.vlgmr.msra.gmra.mxu0 %v7225_v9  ;;  %v6323_v9 = vld [vmem:[%s8999_s1 + $0x6a8] ss:$16 sps:$4 sm:$0xff]  }
  0xcd   : > { %2108 = vmatpush1.bf16.msra.mxu0 %v6311_v26  ;;  %2139 = vmatprep.mubr.bf16.mxu0 %v6923_v18  ;;  %v6388_v26 = vld [vmem:[%s9001_s3 + $0xd4] ss:$8 sps:$4 sm:$0xff]  }
  0xce   : > { %2083 = vmatpush2.bf16.msra.mxu1 %v6308_v25  ;;  %2109 = vmatprep.subr.bf16.mxu0 %v6319_v28  ;;  %v6422_v28 = vld [vmem:[%s9001_s3 + $0x110] ss:$8 sps:$4 sm:$0xff]  }
  0xcf   : > { %2084 = vmatprep.subr.bf16.mxu1 %v6316_v27  ;;  %v6424_v27 = vld [vmem:[%s9001_s3 + $0x114] ss:$8 sps:$4 sm:$0xff]  }
  0xd1   : > { %2110 = vmatpush1.bf16.msra.mxu0 %v6317_v30 }
  0xd2   : > { %2085 = vmatpush2.bf16.msra.mxu1 %v6314_v29  ;;  %2111 = vmatprep.subr.bf16.mxu0 %v6325_v52 }
  0xd3   : > { %2086 = vmatprep.subr.bf16.mxu1 %v6322_v31  ;;  %v6386_v31 = vld [vmem:[%s9001_s3 + $0xd0] ss:$8 sps:$4 sm:$0xff]  }
  0xd5   : > { %2112 = vmatpush1.bf16.msra.mxu0 %v6323_v9  ;;  %v6427_v9 = vld [vmem:[%s9001_s3 + $0x104] ss:$8 sps:$4 sm:$0xff]  }
  0xd6   : > { %2087 = vmatpush2.bf16.msra.mxu1 %v6320_v32  ;;  %2113 = vmatprep.subr.bf16.mxu0 %v6331_v34 }
  0xd7   : > { %2088 = vmatprep.subr.bf16.mxu1 %v6328_v33  ;;  %v6425_v33 = vld [vmem:[%s9001_s3 + $0x100] ss:$8 sps:$4 sm:$0xff]  }
  0xd9   : > { %2114 = vmatpush1.bf16.msra.mxu0 %v6329_v36  ;;  %v6391_v36 = vld [vmem:[%s9001_s3 + $0xc4] ss:$8 sps:$4 sm:$0xff]  }
  0xda   : > { %2089 = vmatpush2.bf16.msra.mxu1 %v6326_v35  ;;  %2115 = vmatprep.subr.bf16.mxu0 %v6337_v38  ;;  %v6428_v38 = vld [vmem:[%s9001_s3 + $0x1f0] ss:$8 sps:$4 sm:$0xff]  }
  0xdb   : > { %2090 = vmatprep.subr.bf16.mxu1 %v6334_v37  ;;  %v6430_v37 = vld [vmem:[%s9001_s3 + $0x1f4] ss:$8 sps:$4 sm:$0xff]  }
  0xdd   : > { %2116 = vmatpush1.bf16.msra.mxu0 %v6335_v41  ;;  %v6389_v41 = vld [vmem:[%s9001_s3 + $0xc0] ss:$8 sps:$4 sm:$0xff]  }
  0xde   : > { %2091 = vmatpush2.bf16.msra.mxu1 %v6332_v40  ;;  %2117 = vmatprep.subr.bf16.mxu0 %v6343_v43  ;;  %v6433_v40 = vld [vmem:[%s9001_s3 + $0x1e4] ss:$8 sps:$4 sm:$0xff]   ;;  %v6431_v43 = vld [vmem:[%s9001_s3 + $0x1e0] ss:$8 sps:$4 sm:$0xff]  }
  0xdf   : > { %2092 = vmatprep.subr.bf16.mxu1 %v6340_v42  ;;  %v6394_v42 = vld [vmem:[%s9001_s3 + $0xb4] ss:$8 sps:$4 sm:$0xff]  }
  0xe1   : > { %2118 = vmatpush1.bf16.msra.mxu0 %v6341_v45  ;;  %v6392_v45 = vld [vmem:[%s9001_s3 + $0xb0] ss:$8 sps:$4 sm:$0xff]  }
  0xe2   : > { %2093 = vmatpush2.bf16.msra.mxu1 %v6338_v44  ;;  %2119 = vmatprep.subr.bf16.mxu0 %v6349_v48  ;;  %v6436_v44 = vld [vmem:[%s9001_s3 + $0x1d4] ss:$8 sps:$4 sm:$0xff]   ;;  %v6434_v48 = vld [vmem:[%s9001_s3 + $0x1d0] ss:$8 sps:$4 sm:$0xff]  }
  0xe3   : > { %2094 = vmatprep.subr.bf16.mxu1 %v6346_v46  ;;  %v6397_v46 = vld [vmem:[%s9001_s3 + $0xa4] ss:$8 sps:$4 sm:$0xff]  }
  0xe5   : > { %2120 = vmatpush1.bf16.msra.mxu0 %v6347_v51  ;;  %v6395_v51 = vld [vmem:[%s9001_s3 + $0xa0] ss:$8 sps:$4 sm:$0xff]  }
  0xe6   : > { %2095 = vmatpush2.bf16.msra.mxu1 %v6344_v50  ;;  %2121 = vmatprep.subr.bf16.mxu0 %v6355_v54  ;;  %v6439_v50 = vld [vmem:[%s9001_s3 + $0x1c4] ss:$8 sps:$4 sm:$0xff]   ;;  %v6437_v54 = vld [vmem:[%s9001_s3 + $0x1c0] ss:$8 sps:$4 sm:$0xff]  }
  0xe7   : > { %2096 = vmatprep.subr.bf16.mxu1 %v6352_v53  ;;  %v6400_v53 = vld [vmem:[%s9001_s3 + $0x94] ss:$8 sps:$4 sm:$0xff]  }
  0xe9   : > { %2122 = vmatpush1.bf16.msra.mxu0 %v6353_v56  ;;  %v6398_v56 = vld [vmem:[%s9001_s3 + $0x90] ss:$8 sps:$4 sm:$0xff]  }
  0xea   : > { %2097 = vmatpush2.bf16.msra.mxu1 %v6350_v55  ;;  %2548 = vmatprep.subr.bf16.mxu0 %v6358_v57  ;;  %v6442_v55 = vld [vmem:[%s9001_s3 + $0x1b4] ss:$8 sps:$4 sm:$0xff]   ;;  %v6403_v57 = vld [vmem:[%s9001_s3 + $0x84] ss:$8 sps:$4 sm:$0xff]  }
  0xec   : > { %2140 = vmatmul.mubr.bf16.vlgmr.msra.gmra.mxu0 %v7334_v47  ;;  %v6404_v47 = vld [vmem:[%s9001_s3 + $0x170] ss:$8 sps:$4 sm:$0xff]  }
  0xed   : > { %2099 = vmatmul.mubr.bf16.vlgmr.msra.gmra.mxu1 %v7432_v20  ;;  %2549 = vmatpush1.bf16.msra.mxu0 %v6356_v58  ;;  %v6406_v20 = vld [vmem:[%s9001_s3 + $0x174] ss:$8 sps:$4 sm:$0xff]   ;;  %v6440_v58 = vld [vmem:[%s9001_s3 + $0x1b0] ss:$8 sps:$4 sm:$0xff]  }
  0xee   : > { %2550 = vmatprep.subr.bf16.mxu0 %v6361_v59  ;;  %2589 = vmatprep.subr.bf16.mxu1 %v6406_v20  ;;  %v6445_v59 = vld [vmem:[%s9001_s3 + $0x1a4] ss:$8 sps:$4 sm:$0xff]   ;;  %v6446_v20 = vld [vmem:[%s9001_s3 + $0x190] ss:$8 sps:$4 sm:$0xff]  }
  0xef   : > { %2590 = vmatpush1.bf16.msra.mxu1 %v6404_v47  ;;  %v6448_v47 = vld [vmem:[%s9001_s3 + $0x194] ss:$8 sps:$4 sm:$0xff]  }
  0xf0   : > { %2591 = vmatprep.subr.bf16.mxu1 %v6409_v63 }
  0xf1   : > { %2551 = vmatpush1.bf16.msra.mxu0 %v6359_v49  ;;  %v6401_v49 = vld [vmem:[%s9001_s3 + $0x80] ss:$8 sps:$4 sm:$0xff]  }
  0xf2   : > { %2552 = vmatprep.subr.bf16.mxu0 %v6364_v60  ;;  %v6443_v60 = vld [vmem:[%s9001_s3 + $0x1a0] ss:$8 sps:$4 sm:$0xff]  }
  0xf3   : > { %2592 = vmatpush1.bf16.msra.mxu1 %v6407_v39  ;;  %v6451_v39 = vld [vmem:[%s9001_s3 + $0x184] ss:$8 sps:$4 sm:$0xff]  }
  0xf4   : > { %2593 = vmatprep.subr.bf16.mxu1 %v6412_v1  ;;  %v6449_v1 = vld [vmem:[%s9001_s3 + $0x180] ss:$8 sps:$4 sm:$0xff]  }
  0xf5   : > { %2553 = vmatpush1.bf16.msra.mxu0 %v6362_v61  ;;  %v680_v61 = vlaneseq }
  0xf6   : > { %2554 = vmatprep.subr.bf16.mxu0 %v6367_v62 }
  0xf7   : > { %2594 = vmatpush1.bf16.msra.mxu1 %v6410_v3 }
  0xf8   : > { %2595 = vmatprep.subr.bf16.mxu1 %v6415_v5  ;;  %v678_v5 = vld [vmem:[%s9000_s2] sm:$0xf] }
  0xf9   : > { %2555 = vmatpush1.bf16.msra.mxu0 %v6365_v8  ;;  %v7918_v8 = vshrl.u32 %v680_v61, 7 }
  0xfa   : > { %2556 = vmatprep.subr.bf16.mxu0 %v6370_v0 }
  0xfb   : > { %2596 = vmatpush1.bf16.msra.mxu1 %v6413_v7  ;;  %v7927_v3 = vsub.s32 0, %v7918_v8 }
  0xfc   : > { %2597 = vmatprep.subr.bf16.mxu1 %v6418_v11 }
  0xfd   : > { %2557 = vmatpush1.bf16.msra.mxu0 %v6368_v2 }
  0xfe   : > { %2558 = vmatprep.subr.bf16.mxu0 %v6373_v4  ;;  %v7930_v4 = vsub.s32 1, %v7918_v8 }
  0xff   : > { %2598 = vmatpush1.bf16.msra.mxu1 %v6416_v13 }
 0x100   : > { %2599 = vmatprep.subr.bf16.mxu1 %v6421_v15  ;;  %v687_v7 = vrot.slane %v678_v5, %v7930_v4 }
 0x101   : > { %2559 = vmatpush1.bf16.msra.mxu0 %v6371_v6  ;;  %v683_v6 = vrot.slane %v678_v5, %v7927_v3 }
 0x102   : > { %2560 = vmatprep.subr.bf16.mxu0 %v6376_v10 }
 0x103   : > { %2600 = vmatpush1.bf16.msra.mxu1 %v6419_v17 }
 0x104   : > { %2601 = vmatprep.subr.bf16.mxu1 %v6424_v27 }
 0x105   : > { %2561 = vmatpush1.bf16.msra.mxu0 %v6374_v12 }
 0x106   : > { %2562 = vmatprep.subr.bf16.mxu0 %v6379_v14 }
 0x107   : > { %2602 = vmatpush1.bf16.msra.mxu1 %v6422_v28 }
 0x108   : > { %2603 = vmatprep.subr.bf16.mxu1 %v6427_v9 }
 0x109   : > { %2563 = vmatpush1.bf16.msra.mxu0 %v6377_v16 }
 0x10a   : > { %2564 = vmatprep.subr.bf16.mxu0 %v6382_v19 }
 0x10b   : > { %2604 = vmatpush1.bf16.msra.mxu1 %v6425_v33  ;;  %v6453_v33 = vld [vmem:[%s9003_s5 + $0x38] sm:$0xff]  }
 0x10c   : > { %v7820_v24 = vpop.f32.mrf.mxu0  ;;  %2605 = vmatprep.subr.bf16.mxu1 %v6430_v37  ;;  %v7957_v37 = vsub.s32 2, %v7918_v8 }
 0x10d   : > { %v7822_v25 = vpop.f32.mrf.mxu1  ;;  %2565 = vmatpush2.bf16.msra.mxu0 %v6380_v21  ;;  %v1855_v10 = vadd.f32 %v7820_v24, %v683_v6  ;;  %v6466_v6 = vld [vmem:[%s9003_s5 + $0x40] sm:$0xff]  }
 0x10e   : > { %v7833_v29 = vpop.f32.mrf.mxu0  ;;  %2566 = vmatprep.subr.bf16.mxu0 %v6385_v22 }
 0x10f   : > { %v7835_v30 = vpop.f32.mrf.mxu1  ;;  %2606 = vmatpush2.bf16.msra.mxu1 %v6428_v38  ;;  %v1857_v11 = vadd.f32 %v7833_v29, %v687_v7  ;;  %v1896_v12 = vadd.f32 %v7822_v25, %v1855_v10  ;;  %v7960_v38 = vsub.s32 3, %v7918_v8  ;;  %v6467_v7 = vld [vmem:[%s9003_s5] sm:$0xff]   ;;  %v6470_v10 = vld [vmem:[%s9005_s7 + $0x74] ss:$8 sps:$4 sm:$0xff]  }
 0x110   : > { %v1858_v52 = vpop.f32.mrf.mxu0  ;;  %2607 = vmatprep.subr.bf16.mxu1 %v6433_v40  ;;  %v6457_v40 = vld [vmem:[%s9003_s5 + $0x28] sm:$0xff]  }
 0x111   : > { %v1899_v32 = vpop.f32.mrf.mxu1  ;;  %2567 = vmatpush2.bf16.msra.mxu0 %v6383_v23  ;;  %v1898_v14 = vadd.f32 %v7835_v30, %v1857_v11  ;;  %v6452_v30 = vld [vmem:[%s9003_s5 + $0x78] sm:$0xff]   ;;  %v6473_v11 = vld [vmem:[%s9005_s7 + $0x64] ss:$8 sps:$4 sm:$0xff]  }
 0x112   : > { %v1859_v34 = vpop.f32.mrf.mxu0  ;;  %2568 = vmatprep.subr.bf16.mxu0 %v6388_v26 }
 0x113   : > { %v1900_v35 = vpop.f32.mrf.mxu1  ;;  %2608 = vmatpush2.bf16.msra.mxu1 %v6431_v43  ;;  %v6454_v34 = vld [vmem:[%s9003_s5 + $0x70] sm:$0xff]   ;;  %v695_v43 = vrot.slane %v678_v5, %v7960_v38 }
 0x114   : > { %2609 = vmatprep.subr.bf16.mxu1 %v6436_v44  ;;  %v6455_v35 = vld [vmem:[%s9003_s5 + $0x30] sm:$0xff]   ;;  %v6459_v44 = vld [vmem:[%s9003_s5 + $0x20] sm:$0xff]  }
 0x115   : > { %2569 = vmatpush2.bf16.msra.mxu0 %v6386_v31 }
 0x116   : > { %2570 = vmatprep.subr.bf16.mxu0 %v6391_v36  ;;  %v6456_v36 = vld [vmem:[%s9003_s5 + $0x68] sm:$0xff]  }
 0x117   : > { %2610 = vmatpush2.bf16.msra.mxu1 %v6434_v48 }
 0x118   : > { %2611 = vmatprep.subr.bf16.mxu1 %v6439_v50 }
 0x119   : > { %2571 = vmatpush2.bf16.msra.mxu0 %v6389_v41  ;;  %v6458_v41 = vld [vmem:[%s9003_s5 + $0x60] sm:$0xff]  }
 0x11a   : > { %2572 = vmatprep.subr.bf16.mxu0 %v6394_v42  ;;  %v691_v42 = vrot.slane %v678_v5, %v7957_v37  ;;  %v6465_v5 = vld [vmem:[%s9003_s5 + $0x8] sm:$0xff]  }
 0x11b   : > { %2612 = vmatpush2.bf16.msra.mxu1 %v6437_v54 }
 0x11c   : > { %2613 = vmatprep.subr.bf16.mxu1 %v6442_v55  ;;  %v6462_v55 = vld [vmem:[%s9003_s5 + $0x50] sm:$0xff]  }
 0x11d   : > { %2573 = vmatpush2.bf16.msra.mxu0 %v6392_v45  ;;  %v6460_v45 = vld [vmem:[%s9003_s5 + $0x58] sm:$0xff]  }
 0x11e   : > { %2574 = vmatprep.subr.bf16.mxu0 %v6397_v46 }
 0x11f   : > { %2614 = vmatpush2.bf16.msra.mxu1 %v6440_v58 }
 0x120   : > { %2615 = vmatprep.subr.bf16.mxu1 %v6445_v59 }
 0x121   : > { %2575 = vmatpush2.bf16.msra.mxu0 %v6395_v51  ;;  %v6461_v51 = vld [vmem:[%s9003_s5 + $0x18] sm:$0xff]  }
 0x122   : > { %2576 = vmatprep.subr.bf16.mxu0 %v6400_v53 }
 0x123   : > { %2616 = vmatpush2.bf16.msra.mxu1 %v6443_v60  ;;  %v6463_v60 = vld [vmem:[%s9003_s5 + $0x10] sm:$0xff]  }
 0x124   : > { %2617 = vmatprep.subr.bf16.mxu1 %v6448_v47 }
 0x125   : > { %2577 = vmatpush2.bf16.msra.mxu0 %v6398_v56 }
 0x126   : > { %2578 = vmatprep.subr.bf16.mxu0 %v6403_v57 }
 0x127   : > { %2618 = vmatpush2.bf16.msra.mxu1 %v6446_v20 }
 0x128   : > { %2619 = vmatprep.subr.bf16.mxu1 %v6451_v39 }
 0x129   : > { %2579 = vmatpush2.bf16.msra.mxu0 %v6401_v49 }
 0x12a   : > { %5941 = vmatprep.subr.bf16.mxu0 %v6452_v30 }
 0x12b   : > { %2620 = vmatpush2.bf16.msra.mxu1 %v6449_v1 }
 0x12c   : > { %2916 = vmatprep.subr.bf16.mxu1 %v6470_v10  ;;  %v6572_v10 = vld [vmem:[%s9007_s9 + $0x144] ss:$16 sps:$4 sm:$0xff]  }
 0x12d   : > { %v1977_v62 = vpop.f32.mrf.mxu1 }
 0x12f   : > { %v1979_v63 = vpop.f32.mrf.mxu1 }
 0x131   : > { %v1981_v0 = vpop.f32.mrf.mxu1 }
 0x133   : > { %v1982_v2 = vpop.f32.mrf.mxu1 }
 0x134   : > { %v6464_v2 = vld [vmem:[%s9003_s5 + $0x48] sm:$0xff]  }
 0x14c   : > { %v1936_v13 = vpop.f32.mrf.mxu0 }
 0x14d   : > { %v1937_v15 = vadd.f32 %v1936_v13, %v1896_v12  ;;  %v6471_v12 = vld [vmem:[%s9005_s7 + $0x60] ss:$8 sps:$4 sm:$0xff]   ;;  %v6476_v13 = vld [vmem:[%s9005_s7 + $0x54] ss:$8 sps:$4 sm:$0xff]  }
 0x14e   : > { %v1938_v16 = vpop.f32.mrf.mxu0 }
 0x14f   : > { %v1939_v17 = vadd.f32 %v1938_v16, %v1898_v14  ;;  %v1978_v19 = vadd.f32 %v1977_v62, %v1937_v15  ;;  %v6474_v14 = vld [vmem:[%s9005_s7 + $0x50] ss:$8 sps:$4 sm:$0xff]   ;;  %v6479_v15 = vld [vmem:[%s9005_s7 + $0x44] ss:$8 sps:$4 sm:$0xff]   ;;  %v6477_v16 = vld [vmem:[%s9005_s7 + $0x40] ss:$8 sps:$4 sm:$0xff]  }
 0x150   : > { %v1940_v21 = vpop.f32.mrf.mxu0 }
 0x151   : > { %v1980_v22 = vadd.f32 %v1979_v63, %v1939_v17  ;;  %v2148_v27 = vpack.c.bf16 %v1978_v19, %v1978_v19  ;;  %v6482_v17 = vld [vmem:[%s9005_s7 + $0x34] ss:$8 sps:$4 sm:$0xff]   ;;  %v6480_v19 = vld [vmem:[%s9005_s7 + $0x30] ss:$8 sps:$4 sm:$0xff]   ;;  %v6485_v21 = vld [vmem:[%s9005_s7 + $0x24] ss:$8 sps:$4 sm:$0xff]  }
 0x152   : > { %v1941_v23 = vpop.f32.mrf.mxu0 }
 0x153   : > { %v2149_v26 = vpack.c.bf16 %v1980_v22, %v1980_v22  ;;  %v6483_v22 = vld [vmem:[%s9005_s7 + $0x20] ss:$8 sps:$4 sm:$0xff]  }
 0x155   : > { %2580 = vmatprep.mubr.bf16.mxu0 %v2149_v26 }
 0x156   : > { %2581 = vmatmul.mubr.bf16.vlgmr.msra.gmra.mxu0 %v2148_v27 }
 0x157   : > { %5942 = vmatpush3.bf16.msra.mxu0 %v6453_v33 }
 0x158   : > { %5943 = vmatprep.subr.bf16.mxu0 %v6454_v34 }
 0x15b   : > { %5944 = vmatpush3.bf16.msra.mxu0 %v6455_v35 }
 0x15c   : > { %5945 = vmatprep.subr.bf16.mxu0 %v6456_v36 }
 0x15f   : > { %5946 = vmatpush3.bf16.msra.mxu0 %v6457_v40 }
 0x160   : > { %5947 = vmatprep.subr.bf16.mxu0 %v6458_v41  ;;  %v6488_v41 = vld [vmem:[%s9005_s7 + $0x14] ss:$8 sps:$4 sm:$0xff]  }
 0x163   : > { %5948 = vmatpush3.bf16.msra.mxu0 %v6459_v44  ;;  %v6489_v44 = vld [vmem:[%s9005_s7] ss:$8 sps:$4 sm:$0xff]  }
 0x164   : > { %5949 = vmatprep.subr.bf16.mxu0 %v6460_v45  ;;  %v6492_v45 = vld [vmem:[%s9007_s9 + $0xe0] ss:$16 sps:$4 sm:$0xff]  }
 0x167   : > { %5950 = vmatpush3.bf16.msra.mxu0 %v6461_v51  ;;  %v6498_v51 = vld [vmem:[%s9007_s9 + $0xc0] ss:$16 sps:$4 sm:$0xff]  }
 0x168   : > { %5951 = vmatprep.subr.bf16.mxu0 %v6462_v55  ;;  %v6512_v55 = vld [vmem:[%s9007_s9 + $0x84] ss:$16 sps:$4 sm:$0xff]  }
 0x16b   : > { %5952 = vmatpush3.bf16.msra.mxu0 %v6463_v60  ;;  %v6530_v60 = vld [vmem:[%s9007_s9 + $0x24] ss:$16 sps:$4 sm:$0xff]  }
 0x16c   : > { %5953 = vmatprep.subr.bf16.mxu0 %v6464_v2  ;;  %v6552_v2 = vld [vmem:[%s9007_s9 + $0x1a0] ss:$16 sps:$4 sm:$0xff]  }
 0x16d   : > { %v2018_v28 = vpop.f32.mrf.mxu1 }
 0x16e   : > { %v2019_v46 = vadd.f32 %v2018_v28, %v691_v42  ;;  %v6486_v42 = vld [vmem:[%s9005_s7 + $0x10] ss:$8 sps:$4 sm:$0xff]  }
 0x16f   : > { %v2020_v24 = vpop.f32.mrf.mxu1  ;;  %5954 = vmatpush3.bf16.msra.mxu0 %v6465_v5  ;;  %v6560_v5 = vld [vmem:[%s9007_s9 + $0x184] ss:$16 sps:$4 sm:$0xff]  }
 0x170   : > { %v2021_v48 = vadd.f32 %v2020_v24, %v695_v43  ;;  %5955 = vmatprep.subr.bf16.mxu0 %v6466_v6  ;;  %v2216_v24 = vld [vmem:[%s9002_s4] sm:$0x3]  ;;  %v6491_v43 = vld [vmem:[%s9005_s7 + $0x4] ss:$8 sps:$4 sm:$0xff]  }
 0x171   : > { %v2022_v31 = vpop.f32.mrf.mxu1  ;;  %v6558_v6 = vld [vmem:[%s9007_s9 + $0x180] ss:$16 sps:$4 sm:$0xff]  }
 0x172   : > { %v2221_v31 = vrot.slane %v2216_v24, %v7927_v3 }
 0x173   : > { %v2023_v29 = vpop.f32.mrf.mxu1  ;;  %5956 = vmatpush3.bf16.msra.mxu0 %v6467_v7  ;;  %v6566_v7 = vld [vmem:[%s9007_s9 + $0x164] ss:$16 sps:$4 sm:$0xff]  }
 0x174   : > { %v2225_v29 = vrot.slane %v2216_v24, %v7930_v4  ;;  %v6515_v24 = vld [vmem:[%s9007_s9 + $0x8c] ss:$16 sps:$4 sm:$0xff]  }
 0x18c   : > { %v2059_v52 = vpop.f32.mrf.mxu0 }
 0x18d   : > { %v2060_v50 = vadd.f32 %v2059_v52, %v2019_v46  ;;  %v6494_v46 = vld [vmem:[%s9007_s9 + $0xe4] ss:$16 sps:$4 sm:$0xff]  }
 0x18e   : > { %v2061_v25 = vpop.f32.mrf.mxu0  ;;  %3365 = vmatprep.subr.bf16.mxu0 %v6494_v46  ;;  %v6569_v46 = vld [vmem:[%s9007_s9 + $0x16c] ss:$16 sps:$4 sm:$0xff]  }
 0x18f   : > { %v2062_v56 = vadd.f32 %v2061_v25, %v2021_v48  ;;  %v6497_v48 = vld [vmem:[%s9007_s9 + $0xec] ss:$16 sps:$4 sm:$0xff]  }
 0x190   : > { %v2063_v32 = vpop.f32.mrf.mxu0 }
 0x192   : > { %v2064_v9 = vpop.f32.mrf.mxu0 }
 0x1ac   : > { %v2141_v54 = vpop.f32.mrf.mxu0 }
 0x1ad   : > { %v2100_v53 = vpop.f32.mrf.mxu1 }
 0x1ae   : > { %v2101_v57 = vadd.f32 %v2100_v53, %v2060_v50  ;;  %v2143_v59 = vpop.f32.mrf.mxu0  ;;  %v6500_v50 = vld [vmem:[%s9007_s9 + $0xc4] ss:$16 sps:$4 sm:$0xff]  }
 0x1af   : > { %v2102_v58 = vpop.f32.mrf.mxu1  ;;  %v6506_v53 = vld [vmem:[%s9007_s9 + $0xa4] ss:$16 sps:$4 sm:$0xff]  }
 0x1b0   : > { %v2103_v49 = vadd.f32 %v2102_v58, %v2062_v56  ;;  %v2142_v61 = vadd.f32 %v2141_v54, %v2101_v57  ;;  %v2145_v47 = vpop.f32.mrf.mxu0  ;;  %v6504_v54 = vld [vmem:[%s9007_s9 + $0xa0] ss:$16 sps:$4 sm:$0xff]   ;;  %v6518_v57 = vld [vmem:[%s9007_s9 + $0x64] ss:$16 sps:$4 sm:$0xff]  }
 0x1b1   : > { %v2104_v62 = vpop.f32.mrf.mxu1  ;;  %v6510_v56 = vld [vmem:[%s9007_s9 + $0x80] ss:$16 sps:$4 sm:$0xff]  }
 0x1b2   : > { %v2144_v20 = vadd.f32 %v2143_v59, %v2103_v49  ;;  %v2146_v0 = vpop.f32.mrf.mxu0  ;;  %v2150_v1 = vpack.c.bf16 %v2142_v61, %v2142_v61  ;;  %v6516_v58 = vld [vmem:[%s9007_s9 + $0x60] ss:$16 sps:$4 sm:$0xff]   ;;  %v6524_v59 = vld [vmem:[%s9007_s9 + $0x44] ss:$16 sps:$4 sm:$0xff]  }
 0x1b3   : > { %v2105_v63 = vpop.f32.mrf.mxu1  ;;  %v6522_v49 = vld [vmem:[%s9007_s9 + $0x40] ss:$16 sps:$4 sm:$0xff]   ;;  %v6536_v62 = vld [vmem:[%s9007_s9 + $0x4] ss:$16 sps:$4 sm:$0xff]  }
 0x1b4   : > { %v2151_v39 = vpack.c.bf16 %v2144_v20, %v2144_v20  ;;  %v6528_v61 = vld [vmem:[%s9007_s9 + $0x20] ss:$16 sps:$4 sm:$0xff]   ;;  %v6542_v20 = vld [vmem:[%s9007_s9 + $0x1e4] ss:$16 sps:$4 sm:$0xff]  }
 0x1b5   : > { %v6534_v47 = vld [vmem:[%s9007_s9] ss:$16 sps:$4 sm:$0xff]   ;;  %v6548_v0 = vld [vmem:[%s9007_s9 + $0x1c4] ss:$16 sps:$4 sm:$0xff]  }
 0x1b6   : > { %2621 = vmatprep.mubr.bf16.mxu1 %v2151_v39  ;;  %v6540_v63 = vld [vmem:[%s9007_s9 + $0x1e0] ss:$16 sps:$4 sm:$0xff]  }
 0x1b7   : > { %2622 = vmatmul.mubr.bf16.vlgmr.msra.gmra.mxu1 %v2150_v1  ;;  %v6546_v39 = vld [vmem:[%s9007_s9 + $0x1c0] ss:$16 sps:$4 sm:$0xff]   ;;  %v6554_v1 = vld [vmem:[%s9007_s9 + $0x1a4] ss:$16 sps:$4 sm:$0xff]  }
 0x1b8   : > { %2948 = vmatprep.mubr.bf16.mxu1 %v6923_v18  ;;  %v6468_v18 = vld [vmem:[%s9005_s7 + $0x70] ss:$8 sps:$4 sm:$0xff]  }
 0x1b9   : > { %2917 = vmatpush1.bf16.msra.mxu1 %v6468_v18  ;;  %v6564_v18 = vld [vmem:[%s9007_s9 + $0x160] ss:$16 sps:$4 sm:$0xff]  }
 0x1ba   : > { %2918 = vmatprep.subr.bf16.mxu1 %v6473_v11  ;;  %v6570_v11 = vld [vmem:[%s9007_s9 + $0x140] ss:$16 sps:$4 sm:$0xff]  }
 0x1bd   : > { %2919 = vmatpush1.bf16.msra.mxu1 %v6471_v12 }
 0x1be   : > { %2920 = vmatprep.subr.bf16.mxu1 %v6476_v13  ;;  %v5616_v13 = vld [vmem:[%s9004_s6] ss:$0 sm:$0xff] }
 0x1c1   : > { %2921 = vmatpush1.bf16.msra.mxu1 %v6474_v14 }
 0x1c2   : > { %2922 = vmatprep.subr.bf16.mxu1 %v6479_v15 }
 0x1c5   : > { %2923 = vmatpush1.bf16.msra.mxu1 %v6477_v16 }
 0x1c6   : > { %2924 = vmatprep.subr.bf16.mxu1 %v6482_v17 }
 0x1c9   : > { %2925 = vmatpush1.bf16.msra.mxu1 %v6480_v19 }
 0x1ca   : > { %2926 = vmatprep.subr.bf16.mxu1 %v6485_v21  ;;  %v6495_v21 = vld [vmem:[%s9007_s9 + $0xe8] ss:$16 sps:$4 sm:$0xff]  }
 0x1cd   : > { %2927 = vmatpush1.bf16.msra.mxu1 %v6483_v22 }
 0x1ce   : > { %2928 = vmatprep.subr.bf16.mxu1 %v6488_v41  ;;  %v6549_v41 = vld [vmem:[%s9007_s9 + $0x1c8] ss:$16 sps:$4 sm:$0xff]  }
 0x1d1   : > { %2929 = vmatpush1.bf16.msra.mxu1 %v6486_v42  ;;  %v6557_v42 = vld [vmem:[%s9007_s9 + $0x1ac] ss:$16 sps:$4 sm:$0xff]  }
 0x1d2   : > { %2930 = vmatprep.subr.bf16.mxu1 %v6491_v43  ;;  %v6555_v43 = vld [vmem:[%s9007_s9 + $0x1a8] ss:$16 sps:$4 sm:$0xff]  }
 0x1d5   : > { %2931 = vmatpush1.bf16.msra.mxu1 %v6489_v44  ;;  %v6563_v44 = vld [vmem:[%s9007_s9 + $0x18c] ss:$16 sps:$4 sm:$0xff]  }
 0x1d6   : > { %3406 = vmatprep.subr.bf16.mxu1 %v6497_v48  ;;  %v6567_v48 = vld [vmem:[%s9007_s9 + $0x168] ss:$16 sps:$4 sm:$0xff]  }
 0x216   : > { %v2582_v23 = vpop.f32.mrf.mxu0 }
 0x217   : > { %v2583_v52 = vadd.f32 %v2582_v23, %v2221_v31  ;;  %v6503_v23 = vld [vmem:[%s9007_s9 + $0xcc] ss:$16 sps:$4 sm:$0xff]   ;;  %v6513_v31 = vld [vmem:[%s9007_s9 + $0x88] ss:$16 sps:$4 sm:$0xff]  }
 0x218   : > { %v2584_v26 = vpop.f32.mrf.mxu0 }
 0x219   : > { %v2585_v32 = vadd.f32 %v2584_v26, %v2225_v29  ;;  %v6501_v26 = vld [vmem:[%s9007_s9 + $0xc8] ss:$16 sps:$4 sm:$0xff]   ;;  %v6521_v29 = vld [vmem:[%s9007_s9 + $0x6c] ss:$16 sps:$4 sm:$0xff]  }
 0x21a   : > { %v2586_v27 = vpop.f32.mrf.mxu0 }
 0x21b   : > { %v6509_v27 = vld [vmem:[%s9007_s9 + $0xac] ss:$16 sps:$4 sm:$0xff]  }
 0x21c   : > { %v2587_v28 = vpop.f32.mrf.mxu0 }
 0x21d   : > { %v6507_v28 = vld [vmem:[%s9007_s9 + $0xa8] ss:$16 sps:$4 sm:$0xff]  }
 0x277   : > { %v2623_v25 = vpop.f32.mrf.mxu1 }
 0x278   : > { %v2624_v9 = vadd.f32 %v2623_v25, %v2583_v52  ;;  %v6519_v52 = vld [vmem:[%s9007_s9 + $0x68] ss:$16 sps:$4 sm:$0xff]   ;;  %v6527_v25 = vld [vmem:[%s9007_s9 + $0x4c] ss:$16 sps:$4 sm:$0xff]  }
 0x279   : > { %v2625_v30 = vpop.f32.mrf.mxu1 }
 0x27a   : > { %v2626_v33 = vadd.f32 %v2625_v30, %v2585_v32  ;;  %v2630_v36 = vpack.c.bf16 %v2624_v9, %v2624_v9  ;;  %v6525_v32 = vld [vmem:[%s9007_s9 + $0x48] ss:$16 sps:$4 sm:$0xff]   ;;  %v6533_v9 = vld [vmem:[%s9007_s9 + $0x2c] ss:$16 sps:$4 sm:$0xff]  }
 0x27b   : > { %v2627_v34 = vpop.f32.mrf.mxu1  ;;  %v6531_v30 = vld [vmem:[%s9007_s9 + $0x28] ss:$16 sps:$4 sm:$0xff]  }
 0x27c   : > { %v2631_v35 = vpack.c.bf16 %v2626_v33, %v2626_v33  ;;  %v6539_v33 = vld [vmem:[%s9007_s9 + $0xc] ss:$16 sps:$4 sm:$0xff]   ;;  %v6537_v34 = vld [vmem:[%s9007_s9 + $0x8] ss:$16 sps:$4 sm:$0xff]  }
 0x27d   : > { %v2628_v40 = vpop.f32.mrf.mxu1 }
 0x27e   : > { %2799 = vmatprep.mubr.bf16.mxu0 %v2631_v35  ;;  %v6545_v35 = vld [vmem:[%s9007_s9 + $0x1ec] ss:$16 sps:$4 sm:$0xff]  }
 0x27f   : > { %2800 = vmatmul.mubr.bf16.vlgmr.msra.gmra.mxu0 %v2630_v36  ;;  %v6543_v36 = vld [vmem:[%s9007_s9 + $0x1e8] ss:$16 sps:$4 sm:$0xff]   ;;  %v6551_v40 = vld [vmem:[%s9007_s9 + $0x1cc] ss:$16 sps:$4 sm:$0xff]  }
 0x280   : > { %3366 = vmatpush1.bf16.msra.mxu0 %v6492_v45  ;;  %v6561_v45 = vld [vmem:[%s9007_s9 + $0x188] ss:$16 sps:$4 sm:$0xff]  }
 0x281   : > { %3367 = vmatprep.subr.bf16.mxu0 %v6500_v50  ;;  %v6575_v50 = vld [vmem:[%s9007_s9 + $0x14c] ss:$16 sps:$4 sm:$0xff]  }
 0x284   : > { %3368 = vmatpush1.bf16.msra.mxu0 %v6498_v51  ;;  %v6573_v51 = vld [vmem:[%s9007_s9 + $0x148] ss:$16 sps:$4 sm:$0xff]  }
 0x285   : > { %3369 = vmatprep.subr.bf16.mxu0 %v6506_v53  ;;  %v6578_v53 = vld [vmem:[%s9007_s9 + $0x124] ss:$16 sps:$4 sm:$0xff]  }
 0x288   : > { %3370 = vmatpush1.bf16.msra.mxu0 %v6504_v54  ;;  %v6581_v54 = vld [vmem:[%s9007_s9 + $0x12c] ss:$16 sps:$4 sm:$0xff]  }
 0x289   : > { %3371 = vmatprep.subr.bf16.mxu0 %v6512_v55  ;;  %v6576_v55 = vld [vmem:[%s9007_s9 + $0x120] ss:$16 sps:$4 sm:$0xff]  }
 0x28c   : > { %3372 = vmatpush1.bf16.msra.mxu0 %v6510_v56  ;;  %v6579_v56 = vld [vmem:[%s9007_s9 + $0x128] ss:$16 sps:$4 sm:$0xff]  }
 0x28d   : > { %3373 = vmatprep.subr.bf16.mxu0 %v6518_v57  ;;  %v6584_v57 = vld [vmem:[%s9007_s9 + $0x104] ss:$16 sps:$4 sm:$0xff]  }
 0x290   : > { %3374 = vmatpush1.bf16.msra.mxu0 %v6516_v58  ;;  %v6587_v58 = vld [vmem:[%s9007_s9 + $0x10c] ss:$16 sps:$4 sm:$0xff]  }
 0x291   : > { %3375 = vmatprep.subr.bf16.mxu0 %v6524_v59  ;;  %v6582_v59 = vld [vmem:[%s9007_s9 + $0x100] ss:$16 sps:$4 sm:$0xff]  }
 0x294   : > { %3376 = vmatpush1.bf16.msra.mxu0 %v6522_v49  ;;  %v6585_v49 = vld [vmem:[%s9007_s9 + $0x108] ss:$16 sps:$4 sm:$0xff]  }
 0x295   : > { %3377 = vmatprep.subr.bf16.mxu0 %v6530_v60  ;;  %v6590_v60 = vld [vmem:[%s9009_s11 + $0x18c] ss:$28 sps:$4 sm:$0xff]  }
 0x298   : > { %3378 = vmatpush1.bf16.msra.mxu0 %v6528_v61  ;;  %v6593_v61 = vld [vmem:[%s9009_s11 + $0x50c] ss:$28 sps:$4 sm:$0xff]  }
 0x299   : > { %3379 = vmatprep.subr.bf16.mxu0 %v6536_v62  ;;  %v2824_v62 = vld [vmem:[%s9006_s8] sm:$0x3] }
 0x29c   : > { %3380 = vmatpush1.bf16.msra.mxu0 %v6534_v47  ;;  %v2829_v47 = vrot.slane %v2824_v62, %v7927_v3 }
 0x29d   : > { %3381 = vmatprep.subr.bf16.mxu0 %v6542_v20  ;;  %v2833_v20 = vrot.slane %v2824_v62, %v7930_v4  ;;  %v6660_v62 = vld [vmem:[%s9009_s11 + $0x268] ss:$28 sps:$4 sm:$0xff]  }
 0x2a0   : > { %3382 = vmatpush2.bf16.msra.mxu0 %v6540_v63 }
 0x2a1   : > { %3383 = vmatprep.subr.bf16.mxu0 %v6548_v0 }
 0x2a4   : > { %3384 = vmatpush2.bf16.msra.mxu0 %v6546_v39 }
 0x2a5   : > { %3385 = vmatprep.subr.bf16.mxu0 %v6554_v1 }
 0x2a8   : > { %3386 = vmatpush2.bf16.msra.mxu0 %v6552_v2 }
 0x2a9   : > { %3387 = vmatprep.subr.bf16.mxu0 %v6560_v5 }
 0x2ac   : > { %3388 = vmatpush2.bf16.msra.mxu0 %v6558_v6  ;;  %v6588_v6 = vld [vmem:[%s9009_s11 + $0x188] ss:$28 sps:$4 sm:$0xff]  }
 0x2ad   : > { %3389 = vmatprep.subr.bf16.mxu0 %v6566_v7  ;;  %v6591_v7 = vld [vmem:[%s9009_s11 + $0x508] ss:$28 sps:$4 sm:$0xff]  }
 0x2b0   : > { %3390 = vmatpush2.bf16.msra.mxu0 %v6564_v18 }
 0x2b1   : > { %3391 = vmatprep.subr.bf16.mxu0 %v6572_v10 }
 0x2b4   : > { %3392 = vmatpush2.bf16.msra.mxu0 %v6570_v11  ;;  %v6596_v11 = vld [vmem:[%s9009_s11 + $0x154] ss:$28 sps:$4 sm:$0xff]  }
 0x2b5   : > { %3393 = vmatprep.subr.bf16.mxu0 %v6578_v53  ;;  %v6650_v53 = vld [vmem:[%s9009_s11 + $0x2dc] ss:$28 sps:$4 sm:$0xff]  }
 0x2b8   : > { %3394 = vmatpush2.bf16.msra.mxu0 %v6576_v55  ;;  %v6648_v55 = vld [vmem:[%s9009_s11 + $0x2d8] ss:$28 sps:$4 sm:$0xff]  }
 0x2b9   : > { %3395 = vmatprep.subr.bf16.mxu0 %v6584_v57  ;;  %v6656_v57 = vld [vmem:[%s9009_s11 + $0x2a4] ss:$28 sps:$4 sm:$0xff]  }
 0x2bc   : > { %3396 = vmatpush2.bf16.msra.mxu0 %v6582_v59  ;;  %v6654_v59 = vld [vmem:[%s9009_s11 + $0x2a0] ss:$28 sps:$4 sm:$0xff]  }
 0x2bd   : > { %4896 = vmatprep.subr.bf16.mxu0 %v6590_v60  ;;  %v6662_v60 = vld [vmem:[%s9009_s11 + $0x26c] ss:$28 sps:$4 sm:$0xff]  }
 0x33f   : > { %v5957_v12 = vpop.f32.mrf.mxu0 }
 0x341   : > { %v5958_v14 = vpop.f32.mrf.mxu0 }
 0x342   : > { %v5959_v15 = vadd.f32 %v5958_v14, %v5957_v12  ;;  %v6599_v12 = vld [vmem:[%s9009_s11 + $0x4d4] ss:$28 sps:$4 sm:$0xff]  }
 0x343   : > { %v5960_v16 = vpop.f32.mrf.mxu0  ;;  %v6597_v14 = vld [vmem:[%s9009_s11 + $0x4d0] ss:$28 sps:$4 sm:$0xff]  }
 0x344   : > { %v2802_v17 = vadd.f32 %v5959_v15, %v5616_v13  ;;  %v6594_v13 = vld [vmem:[%s9009_s11 + $0x150] ss:$28 sps:$4 sm:$0xff]   ;;  %v6602_v15 = vld [vmem:[%s9009_s11 + $0x11c] ss:$28 sps:$4 sm:$0xff]  }
 0x345   : > { %v5961_v19 = vpop.f32.mrf.mxu0  ;;  %v6605_v16 = vld [vmem:[%s9009_s11 + $0x49c] ss:$28 sps:$4 sm:$0xff]  }
 0x346   : > { %v2807_v22 = vpack.c.bf16 %v2802_v17, %v2802_v17  ;;  %v6600_v17 = vld [vmem:[%s9009_s11 + $0x118] ss:$28 sps:$4 sm:$0xff]  }
 0x347   : > { %v6603_v19 = vld [vmem:[%s9009_s11 + $0x498] ss:$28 sps:$4 sm:$0xff]  }
 0x348   : > { %2949 = vmatmul.mubr.bf16.vlgmr.msra.gmra.mxu1 %v2807_v22  ;;  %v6611_v22 = vld [vmem:[%s9009_s11 + $0x464] ss:$28 sps:$4 sm:$0xff]  }
 0x349   : > { %3407 = vmatpush1.bf16.msra.mxu1 %v6495_v21  ;;  %v6608_v21 = vld [vmem:[%s9009_s11 + $0xe4] ss:$28 sps:$4 sm:$0xff]  }
 0x34a   : > { %3408 = vmatprep.subr.bf16.mxu1 %v6503_v23  ;;  %v6606_v23 = vld [vmem:[%s9009_s11 + $0xe0] ss:$28 sps:$4 sm:$0xff]  }
 0x34d   : > { %3409 = vmatpush1.bf16.msra.mxu1 %v6501_v26  ;;  %v6609_v26 = vld [vmem:[%s9009_s11 + $0x460] ss:$28 sps:$4 sm:$0xff]  }
 0x34e   : > { %3410 = vmatprep.subr.bf16.mxu1 %v6509_v27  ;;  %v6614_v27 = vld [vmem:[%s9009_s11 + $0xac] ss:$28 sps:$4 sm:$0xff]  }
 0x351   : > { %3411 = vmatpush1.bf16.msra.mxu1 %v6507_v28  ;;  %v6617_v28 = vld [vmem:[%s9009_s11 + $0x42c] ss:$28 sps:$4 sm:$0xff]  }
 0x352   : > { %3412 = vmatprep.subr.bf16.mxu1 %v6515_v24  ;;  %v6612_v24 = vld [vmem:[%s9009_s11 + $0xa8] ss:$28 sps:$4 sm:$0xff]  }
 0x355   : > { %3413 = vmatpush1.bf16.msra.mxu1 %v6513_v31  ;;  %v6615_v31 = vld [vmem:[%s9009_s11 + $0x428] ss:$28 sps:$4 sm:$0xff]  }
 0x356   : > { %3414 = vmatprep.subr.bf16.mxu1 %v6521_v29  ;;  %v6620_v29 = vld [vmem:[%s9009_s11 + $0x74] ss:$28 sps:$4 sm:$0xff]  }
 0x359   : > { %3415 = vmatpush1.bf16.msra.mxu1 %v6519_v52  ;;  %v6623_v52 = vld [vmem:[%s9009_s11 + $0x3f4] ss:$28 sps:$4 sm:$0xff]  }
 0x35a   : > { %3416 = vmatprep.subr.bf16.mxu1 %v6527_v25  ;;  %v6618_v25 = vld [vmem:[%s9009_s11 + $0x70] ss:$28 sps:$4 sm:$0xff]  }
 0x35d   : > { %3417 = vmatpush1.bf16.msra.mxu1 %v6525_v32  ;;  %v6621_v32 = vld [vmem:[%s9009_s11 + $0x3f0] ss:$28 sps:$4 sm:$0xff]  }
 0x35e   : > { %3418 = vmatprep.subr.bf16.mxu1 %v6533_v9  ;;  %v6626_v9 = vld [vmem:[%s9009_s11 + $0x3c] ss:$28 sps:$4 sm:$0xff]  }
 0x361   : > { %3419 = vmatpush1.bf16.msra.mxu1 %v6531_v30  ;;  %v6629_v30 = vld [vmem:[%s9009_s11 + $0x3bc] ss:$28 sps:$4 sm:$0xff]  }
 0x362   : > { %3420 = vmatprep.subr.bf16.mxu1 %v6539_v33  ;;  %v6624_v33 = vld [vmem:[%s9009_s11 + $0x38] ss:$28 sps:$4 sm:$0xff]  }
 0x365   : > { %3421 = vmatpush1.bf16.msra.mxu1 %v6537_v34  ;;  %v6627_v34 = vld [vmem:[%s9009_s11 + $0x3b8] ss:$28 sps:$4 sm:$0xff]  }
 0x366   : > { %3422 = vmatprep.subr.bf16.mxu1 %v6545_v35  ;;  %v6632_v35 = vld [vmem:[%s9009_s11 + $0x4] ss:$28 sps:$4 sm:$0xff]  }
 0x369   : > { %3423 = vmatpush2.bf16.msra.mxu1 %v6543_v36  ;;  %v6635_v36 = vld [vmem:[%s9009_s11 + $0x384] ss:$28 sps:$4 sm:$0xff]  }
 0x36a   : > { %3424 = vmatprep.subr.bf16.mxu1 %v6551_v40  ;;  %v6630_v40 = vld [vmem:[%s9009_s11] ss:$28 sps:$4 sm:$0xff]  }
 0x36d   : > { %3425 = vmatpush2.bf16.msra.mxu1 %v6549_v41  ;;  %v6633_v41 = vld [vmem:[%s9009_s11 + $0x380] ss:$28 sps:$4 sm:$0xff]  }
 0x36e   : > { %3426 = vmatprep.subr.bf16.mxu1 %v6557_v42  ;;  %v6638_v42 = vld [vmem:[%s9009_s11 + $0x34c] ss:$28 sps:$4 sm:$0xff]  }
 0x371   : > { %3427 = vmatpush2.bf16.msra.mxu1 %v6555_v43  ;;  %v6641_v43 = vld [vmem:[%s9009_s11 + $0x6cc] ss:$28 sps:$4 sm:$0xff]  }
 0x372   : > { %3428 = vmatprep.subr.bf16.mxu1 %v6563_v44  ;;  %v6636_v44 = vld [vmem:[%s9009_s11 + $0x348] ss:$28 sps:$4 sm:$0xff]  }
 0x375   : > { %3429 = vmatpush2.bf16.msra.mxu1 %v6561_v45  ;;  %v6639_v45 = vld [vmem:[%s9009_s11 + $0x6c8] ss:$28 sps:$4 sm:$0xff]  }
 0x376   : > { %3430 = vmatprep.subr.bf16.mxu1 %v6569_v46  ;;  %v6644_v46 = vld [vmem:[%s9009_s11 + $0x314] ss:$28 sps:$4 sm:$0xff]  }
 0x379   : > { %3431 = vmatpush2.bf16.msra.mxu1 %v6567_v48  ;;  %v6647_v48 = vld [vmem:[%s9009_s11 + $0x694] ss:$28 sps:$4 sm:$0xff]  }
 0x37a   : > { %3432 = vmatprep.subr.bf16.mxu1 %v6575_v50  ;;  %v6642_v50 = vld [vmem:[%s9009_s11 + $0x310] ss:$28 sps:$4 sm:$0xff]  }
 0x37d   : > { %3433 = vmatpush2.bf16.msra.mxu1 %v6573_v51  ;;  %v6645_v51 = vld [vmem:[%s9009_s11 + $0x690] ss:$28 sps:$4 sm:$0xff]  }
 0x37e   : > { %3434 = vmatprep.subr.bf16.mxu1 %v6581_v54  ;;  %v6653_v54 = vld [vmem:[%s9009_s11 + $0x65c] ss:$28 sps:$4 sm:$0xff]  }
 0x381   : > { %3435 = vmatpush2.bf16.msra.mxu1 %v6579_v56  ;;  %v6651_v56 = vld [vmem:[%s9009_s11 + $0x658] ss:$28 sps:$4 sm:$0xff]  }
 0x382   : > { %3436 = vmatprep.subr.bf16.mxu1 %v6587_v58  ;;  %v6659_v58 = vld [vmem:[%s9009_s11 + $0x624] ss:$28 sps:$4 sm:$0xff]  }
 0x385   : > { %3437 = vmatpush2.bf16.msra.mxu1 %v6585_v49  ;;  %v6657_v49 = vld [vmem:[%s9009_s11 + $0x620] ss:$28 sps:$4 sm:$0xff]  }
 0x386   : > { %4937 = vmatprep.subr.bf16.mxu1 %v6593_v61  ;;  %v6665_v61 = vld [vmem:[%s9009_s11 + $0x5ec] ss:$28 sps:$4 sm:$0xff]  }
 0x408   : > { %v2950_v63 = vpop.f32.mrf.mxu1 }
 0x409   : > { %v2951_v0 = vadd.f32 %v2950_v63, %v2829_v47  ;;  %v6663_v47 = vld [vmem:[%s9009_s11 + $0x5e8] ss:$28 sps:$4 sm:$0xff]   ;;  %v6671_v63 = vld [vmem:[%s9009_s11 + $0x5b4] ss:$28 sps:$4 sm:$0xff]  }
 0x40a   : > { %v2952_v39 = vpop.f32.mrf.mxu1 }
 0x40b   : > { %v2953_v1 = vadd.f32 %v2952_v39, %v2833_v20  ;;  %v2957_v18 = vpack.c.bf16 %v2951_v0, %v2951_v0  ;;  %v6668_v20 = vld [vmem:[%s9009_s11 + $0x234] ss:$28 sps:$4 sm:$0xff]  }
 0x40c   : > { %v2954_v2 = vpop.f32.mrf.mxu1  ;;  %v6666_v0 = vld [vmem:[%s9009_s11 + $0x230] ss:$28 sps:$4 sm:$0xff]  }
 0x40d   : > { %v2958_v5 = vpack.c.bf16 %v2953_v1, %v2953_v1  ;;  %v6669_v39 = vld [vmem:[%s9009_s11 + $0x5b0] ss:$28 sps:$4 sm:$0xff]   ;;  %v6674_v1 = vld [vmem:[%s9009_s11 + $0x1fc] ss:$28 sps:$4 sm:$0xff]  }
 0x40e   : > { %v2955_v10 = vpop.f32.mrf.mxu1  ;;  %v6677_v2 = vld [vmem:[%s9009_s11 + $0x57c] ss:$28 sps:$4 sm:$0xff]  }
 0x40f   : > { %3397 = vmatprep.mubr.bf16.mxu0 %v2958_v5  ;;  %3438 = vmatprep.mubr.bf16.mxu1 %v2958_v5  ;;  %v6672_v5 = vld [vmem:[%s9009_s11 + $0x1f8] ss:$28 sps:$4 sm:$0xff]   ;;  %v6678_v10 = vld [vmem:[%s9009_s11 + $0x1c0] ss:$28 sps:$4 sm:$0xff]  }
 0x410   : > { %3398 = vmatmul.mubr.bf16.vlgmr.msra.gmra.mxu0 %v2957_v18  ;;  %3439 = vmatmul.mubr.bf16.vlgmr.msra.gmra.mxu1 %v2957_v18  ;;  %v6683_v18 = vld [vmem:[%s9009_s11 + $0x544] ss:$28 sps:$4 sm:$0xff]  }
 0x411   : > { %4897 = vmatpush1.bf16.msra.mxu0 %v6588_v6  ;;  %4938 = vmatpush1.bf16.msra.mxu1 %v6591_v7  ;;  %v6675_v6 = vld [vmem:[%s9009_s11 + $0x578] ss:$28 sps:$4 sm:$0xff]   ;;  %v6680_v7 = vld [vmem:[%s9009_s11 + $0x1c4] ss:$28 sps:$4 sm:$0xff]  }
 0x412   : > { %4898 = vmatprep.subr.bf16.mxu0 %v6596_v11  ;;  %4939 = vmatprep.subr.bf16.mxu1 %v6599_v12  ;;  %v6681_v11 = vld [vmem:[%s9009_s11 + $0x540] ss:$28 sps:$4 sm:$0xff]   ;;  %v6686_v12 = vld [vmem:[%s9009_s11 + $0x194] ss:$28 sps:$4 sm:$0xff]  }
 0x415   : > { %4899 = vmatpush1.bf16.msra.mxu0 %v6594_v13  ;;  %4940 = vmatpush1.bf16.msra.mxu1 %v6597_v14  ;;  %v6689_v13 = vld [vmem:[%s9009_s11 + $0x514] ss:$28 sps:$4 sm:$0xff]   ;;  %v3023_v14 = vld [vmem:[%s9008_s10] sm:$0xf] }
 0x416   : > { %4900 = vmatprep.subr.bf16.mxu0 %v6602_v15  ;;  %4941 = vmatprep.subr.bf16.mxu1 %v6605_v16  ;;  %v3028_v15 = vrot.slane %v3023_v14, %v7927_v3  ;;  %v3036_v16 = vrot.slane %v3023_v14, %v7957_v37 }
 0x419   : > { %4901 = vmatpush1.bf16.msra.mxu0 %v6600_v17  ;;  %4942 = vmatpush1.bf16.msra.mxu1 %v6603_v19  ;;  %v3032_v17 = vrot.slane %v3023_v14, %v7930_v4  ;;  %v3040_v19 = vrot.slane %v3023_v14, %v7960_v38  ;;  %v6746_v14 = vld [vmem:[%s9009_s11 + $0x2e4] ss:$28 sps:$4 sm:$0xff]  }
 0x41a   : > { %4902 = vmatprep.subr.bf16.mxu0 %v6608_v21  ;;  %4943 = vmatprep.subr.bf16.mxu1 %v6611_v22 }
 0x41d   : > { %4903 = vmatpush1.bf16.msra.mxu0 %v6606_v23  ;;  %4944 = vmatpush1.bf16.msra.mxu1 %v6609_v26 }
 0x41e   : > { %4904 = vmatprep.subr.bf16.mxu0 %v6614_v27  ;;  %4945 = vmatprep.subr.bf16.mxu1 %v6617_v28 }
 0x421   : > { %4905 = vmatpush1.bf16.msra.mxu0 %v6612_v24  ;;  %4946 = vmatpush1.bf16.msra.mxu1 %v6615_v31 }
 0x422   : > { %4906 = vmatprep.subr.bf16.mxu0 %v6620_v29  ;;  %4947 = vmatprep.subr.bf16.mxu1 %v6623_v52 }
 0x425   : > { %4907 = vmatpush1.bf16.msra.mxu0 %v6618_v25  ;;  %4948 = vmatpush1.bf16.msra.mxu1 %v6621_v32 }
 0x426   : > { %4908 = vmatprep.subr.bf16.mxu0 %v6626_v9  ;;  %4949 = vmatprep.subr.bf16.mxu1 %v6629_v30  ;;  %v6684_v9 = vld [vmem:[%s9009_s11 + $0x190] ss:$28 sps:$4 sm:$0xff]  }
 0x427   : > { %v6687_v30 = vld [vmem:[%s9009_s11 + $0x510] ss:$28 sps:$4 sm:$0xff]  }
 0x429   : > { %4909 = vmatpush1.bf16.msra.mxu0 %v6624_v33  ;;  %4950 = vmatpush1.bf16.msra.mxu1 %v6627_v34 }
 0x42a   : > { %4910 = vmatprep.subr.bf16.mxu0 %v6632_v35  ;;  %4951 = vmatprep.subr.bf16.mxu1 %v6635_v36 }
 0x42d   : > { %4911 = vmatpush1.bf16.msra.mxu0 %v6630_v40  ;;  %4952 = vmatpush1.bf16.msra.mxu1 %v6633_v41  ;;  %v6692_v40 = vld [vmem:[%s9009_s11 + $0x15c] ss:$28 sps:$4 sm:$0xff]  }
 0x42e   : > { %4912 = vmatprep.subr.bf16.mxu0 %v6638_v42  ;;  %4953 = vmatprep.subr.bf16.mxu1 %v6641_v43  ;;  %v6695_v41 = vld [vmem:[%s9009_s11 + $0x4dc] ss:$28 sps:$4 sm:$0xff]  }
 0x42f   : > { %v6690_v42 = vld [vmem:[%s9009_s11 + $0x158] ss:$28 sps:$4 sm:$0xff]  }
 0x430   : > { %v6693_v43 = vld [vmem:[%s9009_s11 + $0x4d8] ss:$28 sps:$4 sm:$0xff]  }
 0x431   : > { %4913 = vmatpush2.bf16.msra.mxu0 %v6636_v44  ;;  %4954 = vmatpush2.bf16.msra.mxu1 %v6639_v45  ;;  %v6698_v44 = vld [vmem:[%s9009_s11 + $0x124] ss:$28 sps:$4 sm:$0xff]  }
 0x432   : > { %4914 = vmatprep.subr.bf16.mxu0 %v6644_v46  ;;  %4955 = vmatprep.subr.bf16.mxu1 %v6647_v48  ;;  %v6701_v45 = vld [vmem:[%s9009_s11 + $0x4a4] ss:$28 sps:$4 sm:$0xff]  }
 0x433   : > { %v6696_v46 = vld [vmem:[%s9009_s11 + $0x120] ss:$28 sps:$4 sm:$0xff]  }
 0x434   : > { %v6699_v48 = vld [vmem:[%s9009_s11 + $0x4a0] ss:$28 sps:$4 sm:$0xff]  }
 0x435   : > { %4915 = vmatpush2.bf16.msra.mxu0 %v6642_v50  ;;  %4956 = vmatpush2.bf16.msra.mxu1 %v6645_v51  ;;  %v6704_v50 = vld [vmem:[%s9009_s11 + $0xec] ss:$28 sps:$4 sm:$0xff]  }
 0x436   : > { %4916 = vmatprep.subr.bf16.mxu0 %v6650_v53  ;;  %4957 = vmatprep.subr.bf16.mxu1 %v6653_v54  ;;  %v6707_v51 = vld [vmem:[%s9009_s11 + $0x46c] ss:$28 sps:$4 sm:$0xff]  }
 0x437   : > { %v6702_v53 = vld [vmem:[%s9009_s11 + $0xe8] ss:$28 sps:$4 sm:$0xff]  }
 0x438   : > { %v6705_v54 = vld [vmem:[%s9009_s11 + $0x468] ss:$28 sps:$4 sm:$0xff]  }
 0x439   : > { %4917 = vmatpush2.bf16.msra.mxu0 %v6648_v55  ;;  %4958 = vmatpush2.bf16.msra.mxu1 %v6651_v56  ;;  %v6710_v55 = vld [vmem:[%s9009_s11 + $0xb4] ss:$28 sps:$4 sm:$0xff]  }
 0x43a   : > { %4918 = vmatprep.subr.bf16.mxu0 %v6656_v57  ;;  %4959 = vmatprep.subr.bf16.mxu1 %v6659_v58  ;;  %v6713_v56 = vld [vmem:[%s9009_s11 + $0x434] ss:$28 sps:$4 sm:$0xff]  }
 0x43b   : > { %v6708_v57 = vld [vmem:[%s9009_s11 + $0xb0] ss:$28 sps:$4 sm:$0xff]  }
 0x43c   : > { %v6711_v58 = vld [vmem:[%s9009_s11 + $0x430] ss:$28 sps:$4 sm:$0xff]  }
 0x43d   : > { %4919 = vmatpush2.bf16.msra.mxu0 %v6654_v59  ;;  %4960 = vmatpush2.bf16.msra.mxu1 %v6657_v49  ;;  %v6716_v59 = vld [vmem:[%s9009_s11 + $0x7c] ss:$28 sps:$4 sm:$0xff]  }
 0x43e   : > { %4920 = vmatprep.subr.bf16.mxu0 %v6662_v60  ;;  %4961 = vmatprep.subr.bf16.mxu1 %v6665_v61  ;;  %v6719_v49 = vld [vmem:[%s9009_s11 + $0x3fc] ss:$28 sps:$4 sm:$0xff]  }
 0x43f   : > { %v6714_v60 = vld [vmem:[%s9009_s11 + $0x78] ss:$28 sps:$4 sm:$0xff]  }
 0x440   : > { %v6717_v61 = vld [vmem:[%s9009_s11 + $0x3f8] ss:$28 sps:$4 sm:$0xff]  }
 0x441   : > { %4921 = vmatpush2.bf16.msra.mxu0 %v6660_v62  ;;  %4962 = vmatpush2.bf16.msra.mxu1 %v6663_v47  ;;  %v6722_v62 = vld [vmem:[%s9009_s11 + $0x44] ss:$28 sps:$4 sm:$0xff]  }
 0x442   : > { %4922 = vmatprep.subr.bf16.mxu0 %v6668_v20  ;;  %4963 = vmatprep.subr.bf16.mxu1 %v6671_v63  ;;  %v6725_v47 = vld [vmem:[%s9009_s11 + $0x3c4] ss:$28 sps:$4 sm:$0xff]  }
 0x443   : > { %v6720_v20 = vld [vmem:[%s9009_s11 + $0x40] ss:$28 sps:$4 sm:$0xff]  }
 0x444   : > { %v6723_v63 = vld [vmem:[%s9009_s11 + $0x3c0] ss:$28 sps:$4 sm:$0xff]  }
 0x445   : > { %4923 = vmatpush2.bf16.msra.mxu0 %v6666_v0  ;;  %4964 = vmatpush2.bf16.msra.mxu1 %v6669_v39  ;;  %v6728_v0 = vld [vmem:[%s9009_s11 + $0xc] ss:$28 sps:$4 sm:$0xff]  }
 0x446   : > { %4924 = vmatprep.subr.bf16.mxu0 %v6674_v1  ;;  %4965 = vmatprep.subr.bf16.mxu1 %v6677_v2  ;;  %v6731_v39 = vld [vmem:[%s9009_s11 + $0x38c] ss:$28 sps:$4 sm:$0xff]  }
 0x447   : > { %v6726_v1 = vld [vmem:[%s9009_s11 + $0x8] ss:$28 sps:$4 sm:$0xff]  }
 0x448   : > { %v6729_v2 = vld [vmem:[%s9009_s11 + $0x388] ss:$28 sps:$4 sm:$0xff]  }
 0x449   : > { %4925 = vmatpush2.bf16.msra.mxu0 %v6672_v5  ;;  %4966 = vmatpush2.bf16.msra.mxu1 %v6675_v6  ;;  %v6734_v5 = vld [vmem:[%s9009_s11 + $0x354] ss:$28 sps:$4 sm:$0xff]  }
 0x44a   : > { %4926 = vmatprep.subr.bf16.mxu0 %v6680_v7  ;;  %4967 = vmatprep.subr.bf16.mxu1 %v6683_v18  ;;  %v6737_v6 = vld [vmem:[%s9009_s11 + $0x6d4] ss:$28 sps:$4 sm:$0xff]  }
 0x44b   : > { %v6732_v7 = vld [vmem:[%s9009_s11 + $0x350] ss:$28 sps:$4 sm:$0xff]  }
 0x44c   : > { %v6735_v18 = vld [vmem:[%s9009_s11 + $0x6d0] ss:$28 sps:$4 sm:$0xff]  }
 0x44d   : > { %4927 = vmatpush2.bf16.msra.mxu0 %v6678_v10  ;;  %4968 = vmatpush2.bf16.msra.mxu1 %v6681_v11  ;;  %v6740_v10 = vld [vmem:[%s9009_s11 + $0x31c] ss:$28 sps:$4 sm:$0xff]  }
 0x44e   : > { %4978 = vmatprep.subr.bf16.mxu0 %v6686_v12  ;;  %5019 = vmatprep.subr.bf16.mxu1 %v6689_v13  ;;  %v6743_v11 = vld [vmem:[%s9009_s11 + $0x69c] ss:$28 sps:$4 sm:$0xff]  }
 0x44f   : > { %v6738_v12 = vld [vmem:[%s9009_s11 + $0x318] ss:$28 sps:$4 sm:$0xff]  }
 0x450   : > { %v6741_v13 = vld [vmem:[%s9009_s11 + $0x698] ss:$28 sps:$4 sm:$0xff]  }
 0x4d0   : > { %v3399_v21 = vpop.f32.mrf.mxu0  ;;  %v3440_v22 = vpop.f32.mrf.mxu1 }
 0x4d1   : > { %v3400_v23 = vadd.f32 %v3399_v21, %v3028_v15  ;;  %v3441_v26 = vadd.f32 %v3440_v22, %v3036_v16  ;;  %v6749_v15 = vld [vmem:[%s9009_s11 + $0x664] ss:$28 sps:$4 sm:$0xff]   ;;  %v6755_v21 = vld [vmem:[%s9009_s11 + $0x62c] ss:$28 sps:$4 sm:$0xff]  }
 0x4d2   : > { %v3401_v27 = vpop.f32.mrf.mxu0  ;;  %v3442_v28 = vpop.f32.mrf.mxu1  ;;  %v6744_v16 = vld [vmem:[%s9009_s11 + $0x2e0] ss:$28 sps:$4 sm:$0xff]   ;;  %v6750_v22 = vld [vmem:[%s9009_s11 + $0x2a8] ss:$28 sps:$4 sm:$0xff]  }
 0x4d3   : > { %v3402_v24 = vadd.f32 %v3401_v27, %v3032_v17  ;;  %v3443_v31 = vadd.f32 %v3442_v28, %v3040_v19  ;;  %v8466_v33 = vpack.c.bf16 %v3400_v23, %v3400_v23  ;;  %v8468_v34 = vpack.c.bf16 %v3441_v26, %v3441_v26  ;;  %v6747_v17 = vld [vmem:[%s9009_s11 + $0x660] ss:$28 sps:$4 sm:$0xff]   ;;  %v6752_v19 = vld [vmem:[%s9009_s11 + $0x2ac] ss:$28 sps:$4 sm:$0xff]   ;;  %v6758_v26 = vld [vmem:[%s9009_s11 + $0x274] ss:$28 sps:$4 sm:$0xff]  }
 0x4d4   : > { %v3403_v29 = vpop.f32.mrf.mxu0  ;;  %v3444_v52 = vpop.f32.mrf.mxu1  ;;  %v6753_v23 = vld [vmem:[%s9009_s11 + $0x628] ss:$28 sps:$4 sm:$0xff]   ;;  %v6761_v27 = vld [vmem:[%s9009_s11 + $0x5f4] ss:$28 sps:$4 sm:$0xff]  }
 0x4d5   : > { %v8456_v25 = vpack.c.bf16 %v3402_v24, %v3402_v24  ;;  %v8458_v32 = vpack.c.bf16 %v3443_v31, %v3443_v31  ;;  %v6756_v28 = vld [vmem:[%s9009_s11 + $0x270] ss:$28 sps:$4 sm:$0xff]   ;;  %v6764_v31 = vld [vmem:[%s9009_s11 + $0x23c] ss:$28 sps:$4 sm:$0xff]  }
 0x4d6   : > { %v3404_v35 = vpop.f32.mrf.mxu0  ;;  %v3445_v36 = vpop.f32.mrf.mxu1  ;;  %v6759_v24 = vld [vmem:[%s9009_s11 + $0x5f0] ss:$28 sps:$4 sm:$0xff]   ;;  %v6767_v29 = vld [vmem:[%s9009_s11 + $0x5bc] ss:$28 sps:$4 sm:$0xff]  }
 0x4d7   : > { %4928 = vmatprep.mubr.bf16.mxu0 %v8456_v25  ;;  %4969 = vmatprep.mubr.bf16.mxu1 %v8458_v32  ;;  %v6762_v52 = vld [vmem:[%s9009_s11 + $0x238] ss:$28 sps:$4 sm:$0xff]   ;;  %v6773_v35 = vld [vmem:[%s9009_s11 + $0x584] ss:$28 sps:$4 sm:$0xff]  }
 0x4d8   : > { %4929 = vmatmul.mubr.bf16.vlgmr.msra.gmra.mxu0 %v8466_v33  ;;  %4970 = vmatmul.mubr.bf16.vlgmr.msra.gmra.mxu1 %v8468_v34  ;;  %v6768_v36 = vld [vmem:[%s9009_s11 + $0x200] ss:$28 sps:$4 sm:$0xff]  }
 0x4d9   : > { %4979 = vmatpush1.bf16.msra.mxu0 %v6684_v9  ;;  %5020 = vmatpush1.bf16.msra.mxu1 %v6687_v30  ;;  %v6765_v9 = vld [vmem:[%s9009_s11 + $0x5b8] ss:$28 sps:$4 sm:$0xff]   ;;  %v6770_v30 = vld [vmem:[%s9009_s11 + $0x204] ss:$28 sps:$4 sm:$0xff]  }
 0x4da   : > { %5010 = vmatprep.mubr.bf16.mxu0 %v8456_v25  ;;  %5051 = vmatprep.mubr.bf16.mxu1 %v8458_v32 }
 0x4db   : > { %4980 = vmatprep.subr.bf16.mxu0 %v6692_v40  ;;  %5021 = vmatprep.subr.bf16.mxu1 %v6695_v41  ;;  %v6771_v40 = vld [vmem:[%s9009_s11 + $0x580] ss:$28 sps:$4 sm:$0xff]   ;;  %v6776_v41 = vld [vmem:[%s9009_s11 + $0x1cc] ss:$28 sps:$4 sm:$0xff]  }
 0x4dd   : > { %4981 = vmatpush1.bf16.msra.mxu0 %v6690_v42  ;;  %5022 = vmatpush1.bf16.msra.mxu1 %v6693_v43  ;;  %v6779_v42 = vld [vmem:[%s9009_s11 + $0x54c] ss:$28 sps:$4 sm:$0xff]  }
 0x4de   : > { %4982 = vmatprep.subr.bf16.mxu0 %v6698_v44  ;;  %5023 = vmatprep.subr.bf16.mxu1 %v6701_v45  ;;  %v6774_v43 = vld [vmem:[%s9009_s11 + $0x1c8] ss:$28 sps:$4 sm:$0xff]   ;;  %v6782_v45 = vld [vmem:[%s9009_s11 + $0x19c] ss:$28 sps:$4 sm:$0xff]  }
 0x4df   : > { %v6777_v44 = vld [vmem:[%s9009_s11 + $0x548] ss:$28 sps:$4 sm:$0xff]  }
 0x4e1   : > { %4983 = vmatpush1.bf16.msra.mxu0 %v6696_v46  ;;  %5024 = vmatpush1.bf16.msra.mxu1 %v6699_v48  ;;  %v6785_v46 = vld [vmem:[%s9009_s11 + $0x51c] ss:$28 sps:$4 sm:$0xff]  }
 0x4e2   : > { %4984 = vmatprep.subr.bf16.mxu0 %v6704_v50  ;;  %5025 = vmatprep.subr.bf16.mxu1 %v6707_v51  ;;  %v6780_v48 = vld [vmem:[%s9009_s11 + $0x198] ss:$28 sps:$4 sm:$0xff]   ;;  %v6788_v51 = vld [vmem:[%s9009_s11 + $0x164] ss:$28 sps:$4 sm:$0xff]  }
 0x4e3   : > { %v6783_v50 = vld [vmem:[%s9009_s11 + $0x518] ss:$28 sps:$4 sm:$0xff]  }
 0x4e5   : > { %4985 = vmatpush1.bf16.msra.mxu0 %v6702_v53  ;;  %5026 = vmatpush1.bf16.msra.mxu1 %v6705_v54  ;;  %v6791_v53 = vld [vmem:[%s9009_s11 + $0x4e4] ss:$28 sps:$4 sm:$0xff]  }
 0x4e6   : > { %4986 = vmatprep.subr.bf16.mxu0 %v6710_v55  ;;  %5027 = vmatprep.subr.bf16.mxu1 %v6713_v56  ;;  %v6786_v54 = vld [vmem:[%s9009_s11 + $0x160] ss:$28 sps:$4 sm:$0xff]   ;;  %v6794_v56 = vld [vmem:[%s9009_s11 + $0x12c] ss:$28 sps:$4 sm:$0xff]  }
 0x4e7   : > { %v6789_v55 = vld [vmem:[%s9009_s11 + $0x4e0] ss:$28 sps:$4 sm:$0xff]  }
 0x4e9   : > { %4987 = vmatpush1.bf16.msra.mxu0 %v6708_v57  ;;  %5028 = vmatpush1.bf16.msra.mxu1 %v6711_v58  ;;  %v6797_v57 = vld [vmem:[%s9009_s11 + $0x4ac] ss:$28 sps:$4 sm:$0xff]  }
 0x4ea   : > { %4988 = vmatprep.subr.bf16.mxu0 %v6716_v59  ;;  %5029 = vmatprep.subr.bf16.mxu1 %v6719_v49  ;;  %v6792_v58 = vld [vmem:[%s9009_s11 + $0x128] ss:$28 sps:$4 sm:$0xff]   ;;  %v6800_v49 = vld [vmem:[%s9009_s11 + $0xf4] ss:$28 sps:$4 sm:$0xff]  }
 0x4eb   : > { %v6795_v59 = vld [vmem:[%s9009_s11 + $0x4a8] ss:$28 sps:$4 sm:$0xff]  }
 0x4ed   : > { %4989 = vmatpush1.bf16.msra.mxu0 %v6714_v60  ;;  %5030 = vmatpush1.bf16.msra.mxu1 %v6717_v61  ;;  %v6803_v60 = vld [vmem:[%s9009_s11 + $0x474] ss:$28 sps:$4 sm:$0xff]  }
 0x4ee   : > { %4990 = vmatprep.subr.bf16.mxu0 %v6722_v62  ;;  %5031 = vmatprep.subr.bf16.mxu1 %v6725_v47  ;;  %v6798_v61 = vld [vmem:[%s9009_s11 + $0xf0] ss:$28 sps:$4 sm:$0xff]   ;;  %v6806_v47 = vld [vmem:[%s9009_s11 + $0xbc] ss:$28 sps:$4 sm:$0xff]  }
 0x4ef   : > { %v6801_v62 = vld [vmem:[%s9009_s11 + $0x470] ss:$28 sps:$4 sm:$0xff]  }
 0x4f1   : > { %4991 = vmatpush1.bf16.msra.mxu0 %v6720_v20  ;;  %5032 = vmatpush1.bf16.msra.mxu1 %v6723_v63  ;;  %v6809_v20 = vld [vmem:[%s9009_s11 + $0x43c] ss:$28 sps:$4 sm:$0xff]  }
 0x4f2   : > { %4992 = vmatprep.subr.bf16.mxu0 %v6728_v0  ;;  %5033 = vmatprep.subr.bf16.mxu1 %v6731_v39  ;;  %v6804_v63 = vld [vmem:[%s9009_s11 + $0xb8] ss:$28 sps:$4 sm:$0xff]   ;;  %v6812_v39 = vld [vmem:[%s9009_s11 + $0x84] ss:$28 sps:$4 sm:$0xff]  }
 0x4f3   : > { %v6807_v0 = vld [vmem:[%s9009_s11 + $0x438] ss:$28 sps:$4 sm:$0xff]  }
 0x4f5   : > { %4993 = vmatpush1.bf16.msra.mxu0 %v6726_v1  ;;  %5034 = vmatpush1.bf16.msra.mxu1 %v6729_v2  ;;  %v6815_v1 = vld [vmem:[%s9009_s11 + $0x404] ss:$28 sps:$4 sm:$0xff]  }
 0x4f6   : > { %4994 = vmatprep.subr.bf16.mxu0 %v6734_v5  ;;  %5035 = vmatprep.subr.bf16.mxu1 %v6737_v6  ;;  %v6810_v2 = vld [vmem:[%s9009_s11 + $0x80] ss:$28 sps:$4 sm:$0xff]   ;;  %v6818_v6 = vld [vmem:[%s9009_s11 + $0x4c] ss:$28 sps:$4 sm:$0xff]  }
 0x4f7   : > { %v6813_v5 = vld [vmem:[%s9009_s11 + $0x400] ss:$28 sps:$4 sm:$0xff]  }
 0x4f9   : > { %4995 = vmatpush2.bf16.msra.mxu0 %v6732_v7  ;;  %5036 = vmatpush2.bf16.msra.mxu1 %v6735_v18  ;;  %v6821_v7 = vld [vmem:[%s9009_s11 + $0x3cc] ss:$28 sps:$4 sm:$0xff]  }
 0x4fa   : > { %4996 = vmatprep.subr.bf16.mxu0 %v6740_v10  ;;  %5037 = vmatprep.subr.bf16.mxu1 %v6743_v11  ;;  %v6816_v18 = vld [vmem:[%s9009_s11 + $0x48] ss:$28 sps:$4 sm:$0xff]   ;;  %v6824_v11 = vld [vmem:[%s9009_s11 + $0x14] ss:$28 sps:$4 sm:$0xff]  }
 0x4fb   : > { %v6819_v10 = vld [vmem:[%s9009_s11 + $0x3c8] ss:$28 sps:$4 sm:$0xff]  }
 0x4fd   : > { %4997 = vmatpush2.bf16.msra.mxu0 %v6738_v12  ;;  %5038 = vmatpush2.bf16.msra.mxu1 %v6741_v13  ;;  %v6827_v12 = vld [vmem:[%s9009_s11 + $0x394] ss:$28 sps:$4 sm:$0xff]  }
 0x4fe   : > { %4998 = vmatprep.subr.bf16.mxu0 %v6746_v14  ;;  %5039 = vmatprep.subr.bf16.mxu1 %v6749_v15  ;;  %v6822_v13 = vld [vmem:[%s9009_s11 + $0x10] ss:$28 sps:$4 sm:$0xff]   ;;  %v6830_v15 = vld [vmem:[%s9009_s11 + $0x35c] ss:$28 sps:$4 sm:$0xff]  }
 0x4ff   : > { %v6825_v14 = vld [vmem:[%s9009_s11 + $0x390] ss:$28 sps:$4 sm:$0xff]  }
 0x501   : > { %4999 = vmatpush2.bf16.msra.mxu0 %v6744_v16  ;;  %5040 = vmatpush2.bf16.msra.mxu1 %v6747_v17  ;;  %v6833_v16 = vld [vmem:[%s9009_s11 + $0x6dc] ss:$28 sps:$4 sm:$0xff]  }
 0x502   : > { %5000 = vmatprep.subr.bf16.mxu0 %v6752_v19  ;;  %5041 = vmatprep.subr.bf16.mxu1 %v6755_v21  ;;  %v6828_v17 = vld [vmem:[%s9009_s11 + $0x358] ss:$28 sps:$4 sm:$0xff]   ;;  %v6836_v21 = vld [vmem:[%s9009_s11 + $0x324] ss:$28 sps:$4 sm:$0xff]  }
 0x503   : > { %v6831_v19 = vld [vmem:[%s9009_s11 + $0x6d8] ss:$28 sps:$4 sm:$0xff]  }
 0x505   : > { %5001 = vmatpush2.bf16.msra.mxu0 %v6750_v22  ;;  %5042 = vmatpush2.bf16.msra.mxu1 %v6753_v23  ;;  %v6839_v22 = vld [vmem:[%s9009_s11 + $0x6a4] ss:$28 sps:$4 sm:$0xff]  }
 0x506   : > { %5002 = vmatprep.subr.bf16.mxu0 %v6758_v26  ;;  %5043 = vmatprep.subr.bf16.mxu1 %v6761_v27  ;;  %v6834_v23 = vld [vmem:[%s9009_s11 + $0x320] ss:$28 sps:$4 sm:$0xff]   ;;  %v6842_v27 = vld [vmem:[%s9009_s11 + $0x2ec] ss:$28 sps:$4 sm:$0xff]  }
 0x507   : > { %v6837_v26 = vld [vmem:[%s9009_s11 + $0x6a0] ss:$28 sps:$4 sm:$0xff]  }
 0x509   : > { %5003 = vmatpush2.bf16.msra.mxu0 %v6756_v28  ;;  %5044 = vmatpush2.bf16.msra.mxu1 %v6759_v24  ;;  %v6845_v28 = vld [vmem:[%s9009_s11 + $0x66c] ss:$28 sps:$4 sm:$0xff]  }
 0x50a   : > { %5004 = vmatprep.subr.bf16.mxu0 %v6764_v31  ;;  %5045 = vmatprep.subr.bf16.mxu1 %v6767_v29  ;;  %v6840_v24 = vld [vmem:[%s9009_s11 + $0x2e8] ss:$28 sps:$4 sm:$0xff]   ;;  %v6848_v29 = vld [vmem:[%s9009_s11 + $0x2b4] ss:$28 sps:$4 sm:$0xff]  }
 0x50b   : > { %v6843_v31 = vld [vmem:[%s9009_s11 + $0x668] ss:$28 sps:$4 sm:$0xff]  }
 0x50d   : > { %5005 = vmatpush2.bf16.msra.mxu0 %v6762_v52  ;;  %5046 = vmatpush2.bf16.msra.mxu1 %v6765_v9  ;;  %v6851_v52 = vld [vmem:[%s9009_s11 + $0x634] ss:$28 sps:$4 sm:$0xff]  }
 0x50e   : > { %5006 = vmatprep.subr.bf16.mxu0 %v6770_v30  ;;  %5047 = vmatprep.subr.bf16.mxu1 %v6773_v35  ;;  %v6846_v9 = vld [vmem:[%s9009_s11 + $0x2b0] ss:$28 sps:$4 sm:$0xff]   ;;  %v6854_v35 = vld [vmem:[%s9009_s11 + $0x27c] ss:$28 sps:$4 sm:$0xff]  }
 0x50f   : > { %v6849_v30 = vld [vmem:[%s9009_s11 + $0x630] ss:$28 sps:$4 sm:$0xff]  }
 0x511   : > { %5007 = vmatpush2.bf16.msra.mxu0 %v6768_v36  ;;  %5048 = vmatpush2.bf16.msra.mxu1 %v6771_v40  ;;  %v6857_v36 = vld [vmem:[%s9009_s11 + $0x5fc] ss:$28 sps:$4 sm:$0xff]  }
 0x512   : > { %5008 = vmatprep.subr.bf16.mxu0 %v6776_v41  ;;  %5049 = vmatprep.subr.bf16.mxu1 %v6779_v42  ;;  %v6852_v40 = vld [vmem:[%s9009_s11 + $0x278] ss:$28 sps:$4 sm:$0xff]   ;;  %v6860_v42 = vld [vmem:[%s9009_s11 + $0x244] ss:$28 sps:$4 sm:$0xff]  }
 0x513   : > { %v6855_v41 = vld [vmem:[%s9009_s11 + $0x5f8] ss:$28 sps:$4 sm:$0xff]  }
 0x515   : > { %5009 = vmatpush2.bf16.msra.mxu0 %v6774_v43  ;;  %5050 = vmatpush2.bf16.msra.mxu1 %v6777_v44  ;;  %v6863_v43 = vld [vmem:[%s9009_s11 + $0x5c4] ss:$28 sps:$4 sm:$0xff]  }
 0x516   : > { %5060 = vmatprep.subr.bf16.mxu0 %v6782_v45  ;;  %5101 = vmatprep.subr.bf16.mxu1 %v6785_v46  ;;  %v6858_v44 = vld [vmem:[%s9009_s11 + $0x240] ss:$28 sps:$4 sm:$0xff]   ;;  %v6866_v46 = vld [vmem:[%s9009_s11 + $0x20c] ss:$28 sps:$4 sm:$0xff]  }
 0x517   : > { %v6861_v45 = vld [vmem:[%s9009_s11 + $0x5c0] ss:$28 sps:$4 sm:$0xff]  }
 0x518   : > { %5011 = vmatmul.mubr.bf16.vlgmr.msra.gmra.mxu0 %v8466_v33  ;;  %5052 = vmatmul.mubr.bf16.vlgmr.msra.gmra.mxu1 %v8468_v34 }
 0x519   : > { %5061 = vmatpush1.bf16.msra.mxu0 %v6780_v48  ;;  %5092 = vmatprep.mubr.bf16.mxu0 %v8456_v25  ;;  %v6869_v48 = vld [vmem:[%s9009_s11 + $0x58c] ss:$28 sps:$4 sm:$0xff]  }
 0x51a   : > { %5102 = vmatpush1.bf16.msra.mxu1 %v6783_v50  ;;  %5133 = vmatprep.mubr.bf16.mxu1 %v8458_v32  ;;  %v6864_v50 = vld [vmem:[%s9009_s11 + $0x208] ss:$28 sps:$4 sm:$0xff]  }
 0x51b   : > { %5062 = vmatprep.subr.bf16.mxu0 %v6788_v51  ;;  %5103 = vmatprep.subr.bf16.mxu1 %v6791_v53  ;;  %v6867_v51 = vld [vmem:[%s9009_s11 + $0x588] ss:$28 sps:$4 sm:$0xff]   ;;  %v6872_v53 = vld [vmem:[%s9009_s11 + $0x1d4] ss:$28 sps:$4 sm:$0xff]  }
 0x51d   : > { %5063 = vmatpush1.bf16.msra.mxu0 %v6786_v54  ;;  %v6875_v54 = vld [vmem:[%s9009_s11 + $0x554] ss:$28 sps:$4 sm:$0xff]  }
 0x51e   : > { %5104 = vmatpush1.bf16.msra.mxu1 %v6789_v55  ;;  %5064 = vmatprep.subr.bf16.mxu0 %v6794_v56  ;;  %v6870_v55 = vld [vmem:[%s9009_s11 + $0x1d0] ss:$28 sps:$4 sm:$0xff]  }
 0x51f   : > { %5105 = vmatprep.subr.bf16.mxu1 %v6797_v57  ;;  %v6873_v56 = vld [vmem:[%s9009_s11 + $0x550] ss:$28 sps:$4 sm:$0xff]   ;;  %v6876_v57 = vld [vmem:[%s9009_s11 + $0x360] ss:$28 sps:$4 sm:$0xff]  }
 0x521   : > { %5065 = vmatpush1.bf16.msra.mxu0 %v6792_v58  ;;  %v6877_v58 = vld [vmem:[%s9009_s11 + $0x6e0] ss:$28 sps:$4 sm:$0xff]  }
 0x522   : > { %5106 = vmatpush1.bf16.msra.mxu1 %v6795_v59  ;;  %5066 = vmatprep.subr.bf16.mxu0 %v6800_v49  ;;  %v6878_v59 = vld [vmem:[%s9009_s11 + $0x1a0] ss:$28 sps:$4 sm:$0xff]  }
 0x523   : > { %5107 = vmatprep.subr.bf16.mxu1 %v6803_v60  ;;  %v6879_v49 = vld [vmem:[%s9009_s11 + $0x520] ss:$28 sps:$4 sm:$0xff]   ;;  %v6880_v60 = vld [vmem:[%s9009_s11 + $0x328] ss:$28 sps:$4 sm:$0xff]  }
 0x525   : > { %5067 = vmatpush1.bf16.msra.mxu0 %v6798_v61  ;;  %v6881_v61 = vld [vmem:[%s9009_s11 + $0x6a8] ss:$28 sps:$4 sm:$0xff]  }
 0x526   : > { %5108 = vmatpush1.bf16.msra.mxu1 %v6801_v62  ;;  %5068 = vmatprep.subr.bf16.mxu0 %v6806_v47  ;;  %v6882_v62 = vld [vmem:[%s9009_s11 + $0x168] ss:$28 sps:$4 sm:$0xff]  }
 0x527   : > { %5109 = vmatprep.subr.bf16.mxu1 %v6809_v20  ;;  %v6883_v47 = vld [vmem:[%s9009_s11 + $0x4e8] ss:$28 sps:$4 sm:$0xff]   ;;  %v6884_v20 = vld [vmem:[%s9009_s11 + $0x2f0] ss:$28 sps:$4 sm:$0xff]  }
 0x529   : > { %5069 = vmatpush1.bf16.msra.mxu0 %v6804_v63  ;;  %v6885_v63 = vld [vmem:[%s9009_s11 + $0x670] ss:$28 sps:$4 sm:$0xff]  }
 0x52a   : > { %5110 = vmatpush1.bf16.msra.mxu1 %v6807_v0  ;;  %5070 = vmatprep.subr.bf16.mxu0 %v6812_v39  ;;  %v6887_v0 = vld [vmem:[%s9009_s11 + $0x4b0] ss:$28 sps:$4 sm:$0xff]   ;;  %v6889_v39 = vld [vmem:[%s9009_s11 + $0x638] ss:$28 sps:$4 sm:$0xff]  }
 0x52b   : > { %5111 = vmatprep.subr.bf16.mxu1 %v6815_v1  ;;  %v6890_v1 = vld [vmem:[%s9009_s11 + $0xf8] ss:$28 sps:$4 sm:$0xff]  }
 0x52d   : > { %5071 = vmatpush1.bf16.msra.mxu0 %v6810_v2  ;;  %v6891_v2 = vld [vmem:[%s9009_s11 + $0x478] ss:$28 sps:$4 sm:$0xff]  }
 0x52e   : > { %5112 = vmatpush1.bf16.msra.mxu1 %v6813_v5  ;;  %5072 = vmatprep.subr.bf16.mxu0 %v6818_v6  ;;  %v6892_v5 = vld [vmem:[%s9009_s11 + $0x280] ss:$28 sps:$4 sm:$0xff]  }
 0x52f   : > { %5113 = vmatprep.subr.bf16.mxu1 %v6821_v7  ;;  %v6893_v6 = vld [vmem:[%s9009_s11 + $0x600] ss:$28 sps:$4 sm:$0xff]  }
 0x530   : > { %v6894_v7 = vld [vmem:[%s9009_s11 + $0xc0] ss:$28 sps:$4 sm:$0xff]  }
 0x531   : > { %5073 = vmatpush1.bf16.msra.mxu0 %v6816_v18  ;;  %v6895_v18 = vld [vmem:[%s9009_s11 + $0x440] ss:$28 sps:$4 sm:$0xff]  }
 0x532   : > { %5114 = vmatpush1.bf16.msra.mxu1 %v6819_v10  ;;  %5074 = vmatprep.subr.bf16.mxu0 %v6824_v11  ;;  %v6896_v10 = vld [vmem:[%s9009_s11 + $0x248] ss:$28 sps:$4 sm:$0xff]  }
 0x533   : > { %5115 = vmatprep.subr.bf16.mxu1 %v6827_v12  ;;  %v6897_v11 = vld [vmem:[%s9009_s11 + $0x5c8] ss:$28 sps:$4 sm:$0xff]  }
 0x534   : > { %v6898_v12 = vld [vmem:[%s9009_s11 + $0x88] ss:$28 sps:$4 sm:$0xff]  }
 0x535   : > { %5075 = vmatpush1.bf16.msra.mxu0 %v6822_v13  ;;  %v6899_v13 = vld [vmem:[%s9009_s11 + $0x408] ss:$28 sps:$4 sm:$0xff]  }
 0x536   : > { %5116 = vmatpush1.bf16.msra.mxu1 %v6825_v14  ;;  %5076 = vmatprep.subr.bf16.mxu0 %v6830_v15  ;;  %v6900_v14 = vld [vmem:[%s9009_s11 + $0x210] ss:$28 sps:$4 sm:$0xff]  }
 0x537   : > { %5117 = vmatprep.subr.bf16.mxu1 %v6833_v16  ;;  %v6901_v15 = vld [vmem:[%s9009_s11 + $0x590] ss:$28 sps:$4 sm:$0xff]  }
 0x538   : > { %v6902_v16 = vld [vmem:[%s9009_s11 + $0x50] ss:$28 sps:$4 sm:$0xff]  }
 0x539   : > { %5077 = vmatpush2.bf16.msra.mxu0 %v6828_v17  ;;  %v6903_v17 = vld [vmem:[%s9009_s11 + $0x3d0] ss:$28 sps:$4 sm:$0xff]  }
 0x53a   : > { %5118 = vmatpush2.bf16.msra.mxu1 %v6831_v19  ;;  %5078 = vmatprep.subr.bf16.mxu0 %v6836_v21  ;;  %v6904_v19 = vld [vmem:[%s9009_s11 + $0x1d8] ss:$28 sps:$4 sm:$0xff]  }
 0x53b   : > { %5119 = vmatprep.subr.bf16.mxu1 %v6839_v22  ;;  %v6905_v21 = vld [vmem:[%s9009_s11 + $0x558] ss:$28 sps:$4 sm:$0xff]  }
 0x53c   : > { %v6906_v22 = vld [vmem:[%s9009_s11 + $0x18] ss:$28 sps:$4 sm:$0xff]  }
 0x53d   : > { %5079 = vmatpush2.bf16.msra.mxu0 %v6834_v23  ;;  %v6907_v23 = vld [vmem:[%s9009_s11 + $0x398] ss:$28 sps:$4 sm:$0xff]  }
 0x53e   : > { %5120 = vmatpush2.bf16.msra.mxu1 %v6837_v26  ;;  %5080 = vmatprep.subr.bf16.mxu0 %v6842_v27  ;;  %v8958_v26 = vld [vmem:[%s9010_s12] sm:$0xff]  ;;  %v5225_v27 = vstv %s5937_s21 }
 0x53f   : > { %5121 = vmatprep.subr.bf16.mxu1 %v6845_v28  ;;  %v3712_v28 = vrot.slane %v8958_v26, %v7927_v3  ;;  %v6908_v3 = vld [vmem:[%s7145_s30] sm:$0xff] }
 0x541   : > { %5081 = vmatpush2.bf16.msra.mxu0 %v6840_v24  ;;  %v5226_v24 = vadd.s32 %v5225_v27, %v7918_v8 }
 0x542   : > { %5122 = vmatpush2.bf16.msra.mxu1 %v6843_v31  ;;  %5082 = vmatprep.subr.bf16.mxu0 %v6848_v29  ;;  %v3716_v31 = vrot.slane %v8958_v26, %v7930_v4 }
 0x543   : > { %5123 = vmatprep.subr.bf16.mxu1 %v6851_v52  ;;  %vm5227_vm0 = vcmp.lt.s32.totalorder %v5226_v24, 20 }
 0x545   : > { %5083 = vmatpush2.bf16.msra.mxu0 %v6846_v9 }
 0x546   : > { %5124 = vmatpush2.bf16.msra.mxu1 %v6849_v30  ;;  %5084 = vmatprep.subr.bf16.mxu0 %v6854_v35 }
 0x547   : > { %5125 = vmatprep.subr.bf16.mxu1 %v6857_v36  ;;  %v6924_v36 = vmov 0.0  }
 0x549   : > { %5085 = vmatpush2.bf16.msra.mxu0 %v6852_v40  ;;  %v8965_v40 = vsel %vm5227_vm0, 1.0, %v6924_v36 }
 0x54a   : > { %5126 = vmatpush2.bf16.msra.mxu1 %v6855_v41  ;;  %5086 = vmatprep.subr.bf16.mxu0 %v6860_v42 }
 0x54b   : > { %5127 = vmatprep.subr.bf16.mxu1 %v6863_v43 }
 0x54d   : > { %5087 = vmatpush2.bf16.msra.mxu0 %v6858_v44 }
 0x54e   : > { %5128 = vmatpush2.bf16.msra.mxu1 %v6861_v45  ;;  %5088 = vmatprep.subr.bf16.mxu0 %v6866_v46 }
 0x54f   : > { %5129 = vmatprep.subr.bf16.mxu1 %v6869_v48  ;;  %v6909_v48 = vld [vmem:[%s7145_s30 + $0x8] sm:$0xff] }
 0x551   : > { %5089 = vmatpush2.bf16.msra.mxu0 %v6864_v50 }
 0x552   : > { %5130 = vmatpush2.bf16.msra.mxu1 %v6867_v51  ;;  %5090 = vmatprep.subr.bf16.mxu0 %v6872_v53 }
 0x553   : > { %5131 = vmatprep.subr.bf16.mxu1 %v6875_v54 }
 0x555   : > { %5091 = vmatpush2.bf16.msra.mxu0 %v6870_v55 }
 0x556   : > { %5132 = vmatpush2.bf16.msra.mxu1 %v6873_v56  ;;  %5963 = vmatprep.subr.bf16.mxu0 %v6876_v57  ;;  %v3720_v56 = vrot.slane %v8958_v26, %v7957_v37  ;;  %v3724_v57 = vrot.slane %v8958_v26, %v7960_v38 }
 0x557   : > { %5985 = vmatprep.subr.bf16.mxu1 %v6877_v58 }
 0x558   : > { %5093 = vmatmul.mubr.bf16.vlgmr.msra.gmra.mxu0 %v8466_v33 }
 0x559   : > { %5134 = vmatmul.mubr.bf16.vlgmr.msra.gmra.mxu1 %v8468_v34  ;;  %5964 = vmatpush3.bf16.msra.mxu0 %v6878_v59 }
 0x55a   : > { %5174 = vmatprep.mubr.bf16.mxu0 %v8456_v25  ;;  %5986 = vmatpush3.bf16.msra.mxu1 %v6879_v49  ;;  %v6886_v25 = vld [vmem:[%s9009_s11 + $0x130] ss:$28 sps:$4 sm:$0xff]  }
 0x55b   : > { %5214 = vmatprep.mubr.bf16.mxu1 %v8458_v32  ;;  %5965 = vmatprep.subr.bf16.mxu0 %v6880_v60  ;;  %v6888_v32 = vld [vmem:[%s9009_s11 + $0x2b8] ss:$28 sps:$4 sm:$0xff]  }
 0x55c   : > { %5987 = vmatprep.subr.bf16.mxu1 %v6881_v61 }
 0x55d   : > { %5966 = vmatpush3.bf16.msra.mxu0 %v6882_v62 }
 0x55e   : > { %5988 = vmatpush3.bf16.msra.mxu1 %v6883_v47  ;;  %5967 = vmatprep.subr.bf16.mxu0 %v6884_v20 }
 0x55f   : > { %5989 = vmatprep.subr.bf16.mxu1 %v6885_v63 }
 0x561   : > { %5968 = vmatpush3.bf16.msra.mxu0 %v6886_v25  ;;  %v6910_v25 = vld [vmem:[%s7145_s30 + $0x10] sm:$0xff] }
 0x562   : > { %5990 = vmatpush3.bf16.msra.mxu1 %v6887_v0  ;;  %5969 = vmatprep.subr.bf16.mxu0 %v6888_v32 }
 0x563   : > { %5991 = vmatprep.subr.bf16.mxu1 %v6889_v39 }
 0x565   : > { %5970 = vmatpush3.bf16.msra.mxu0 %v6890_v1 }
 0x566   : > { %5992 = vmatpush3.bf16.msra.mxu1 %v6891_v2  ;;  %5971 = vmatprep.subr.bf16.mxu0 %v6892_v5  ;;  %v6911_v2 = vld [vmem:[%s7145_s30 + $0x18] sm:$0xff] }
 0x567   : > { %5993 = vmatprep.subr.bf16.mxu1 %v6893_v6 }
 0x569   : > { %5972 = vmatpush3.bf16.msra.mxu0 %v6894_v7 }
 0x56a   : > { %5994 = vmatpush3.bf16.msra.mxu1 %v6895_v18  ;;  %5973 = vmatprep.subr.bf16.mxu0 %v6896_v10 }
 0x56b   : > { %5995 = vmatprep.subr.bf16.mxu1 %v6897_v11 }
 0x56d   : > { %5974 = vmatpush3.bf16.msra.mxu0 %v6898_v12 }
 0x56e   : > { %5996 = vmatpush3.bf16.msra.mxu1 %v6899_v13  ;;  %5975 = vmatprep.subr.bf16.mxu0 %v6900_v14 }
 0x56f   : > { %5997 = vmatprep.subr.bf16.mxu1 %v6901_v15 }
 0x571   : > { %5976 = vmatpush3.bf16.msra.mxu0 %v6902_v16 }
 0x572   : > { %5998 = vmatpush3.bf16.msra.mxu1 %v6903_v17  ;;  %5977 = vmatprep.subr.bf16.mxu0 %v6904_v19 }
 0x573   : > { %5999 = vmatprep.subr.bf16.mxu1 %v6905_v21  ;;  %v3727_v21 = vsub.s32 4, %v7918_v8 }
 0x575   : > { %5978 = vmatpush3.bf16.msra.mxu0 %v6906_v22  ;;  %v3728_v22 = vrot.slane %v8958_v26, %v3727_v21 }
 0x576   : > { %6000 = vmatpush3.bf16.msra.mxu1 %v6907_v23  ;;  %v3731_v23 = vsub.s32 5, %v7918_v8 }
 0x578   : > { %5175 = vmatmul.mubr.bf16.vlgmr.msra.gmra.mxu0 %v8466_v33 }
 0x579   : > { %5215 = vmatmul.mubr.bf16.vlgmr.msra.gmra.mxu1 %v8468_v34 }
 0x598   : > { %v4930_v29 = vpop.f32.mrf.mxu0  ;;  %v4971_v33 = vpop.f32.mrf.mxu1 }
 0x599   : > { %v4931_v52 = vadd.f32 %v4930_v29, %v3712_v28  ;;  %v3732_v28 = vrot.slane %v8958_v26, %v3731_v23  ;;  %v6912_v29 = vld [vmem:[%s7145_s30 + $0x20] sm:$0xff] }
 0x59a   : > { %v4932_v34 = vpop.f32.mrf.mxu0  ;;  %v4973_v9 = vpop.f32.mrf.mxu1 }
 0x59b   : > { %v4972_v30 = vadd.f32 %v4971_v33, %v4931_v52  ;;  %v4933_v35 = vadd.f32 %v4932_v34, %v3716_v31  ;;  %v3735_v34 = vsub.s32 6, %v7918_v8 }
 0x59c   : > { %v4934_v41 = vpop.f32.mrf.mxu0  ;;  %v4975_v42 = vpop.f32.mrf.mxu1 }
 0x59d   : > { %v5230_v43 = vsub.f32 %v6908_v3, %v4972_v30  ;;  %v4974_v44 = vadd.f32 %v4973_v9, %v4933_v35  ;;  %v6913_v35 = vld [vmem:[%s7145_s30 + $0x28] sm:$0xff]  ;;  %v3736_v42 = vrot.slane %v8958_v26, %v3735_v34 }
 0x59e   : > { %v4935_v45 = vpop.f32.mrf.mxu0  ;;  %v4976_v46 = vpop.f32.mrf.mxu1 }
 0x59f   : > { %v5237_v4 = vmul.f32 %v8965_v40, %v5230_v43  ;;  %v5231_v50 = vsub.f32 %v6909_v48, %v4974_v44 }
 0x5a1   : > { %v5238_v51 = vmul.f32 %v8965_v40, %v5231_v50  ;;  %v5244_v53 = vmul.f32 %v5237_v4, %v5237_v4 }
 0x5a3   : > { %v5245_v54 = vmul.f32 %v5238_v51, %v5238_v51 }
 0x5a5   : > { %v5251_v55 = vadd.f32 %v5245_v54, %v5244_v53 }
 0x5d8   : > { %v5012_v58 = vpop.f32.mrf.mxu0  ;;  %v5053_v59 = vpop.f32.mrf.mxu1 }
 0x5d9   : > { %v5013_v49 = vadd.f32 %v5012_v58, %v3720_v56 }
 0x5da   : > { %v5014_v60 = vpop.f32.mrf.mxu0  ;;  %v5055_v61 = vpop.f32.mrf.mxu1 }
 0x5db   : > { %v5054_v62 = vadd.f32 %v5053_v59, %v5013_v49  ;;  %v5015_v47 = vadd.f32 %v5014_v60, %v3724_v57 }
 0x5dc   : > { %v5016_v20 = vpop.f32.mrf.mxu0  ;;  %v5057_v63 = vpop.f32.mrf.mxu1 }
 0x5dd   : > { %v5232_v0 = vsub.f32 %v6910_v25, %v5054_v62  ;;  %v5056_v32 = vadd.f32 %v5055_v61, %v5015_v47 }
 0x5de   : > { %v5017_v39 = vpop.f32.mrf.mxu0  ;;  %v5058_v1 = vpop.f32.mrf.mxu1 }
 0x5df   : > { %v5239_v37 = vmul.f32 %v8965_v40, %v5232_v0  ;;  %v5233_v5 = vsub.f32 %v6911_v2, %v5056_v32 }
 0x5e1   : > { %v5246_v38 = vmul.f32 %v5239_v37, %v5239_v37  ;;  %v5240_v6 = vmul.f32 %v8965_v40, %v5233_v5 }
 0x5e3   : > { %v5252_v7 = vadd.f32 %v5251_v55, %v5246_v38  ;;  %v5247_v18 = vmul.f32 %v5240_v6, %v5240_v6  ;;  %v6914_v55 = vld [vmem:[%s7145_s30 + $0x30] sm:$0xff] }
 0x5e5   : > { %v5253_v10 = vadd.f32 %v5252_v7, %v5247_v18 }
 0x618   : > { %v5094_v11 = vpop.f32.mrf.mxu0 }
 0x619   : > { %v5135_v12 = vpop.f32.mrf.mxu1  ;;  %v5095_v27 = vadd.f32 %v5094_v11, %v3728_v22 }
 0x61a   : > { %v5096_v13 = vpop.f32.mrf.mxu0 }
 0x61b   : > { %v5137_v14 = vpop.f32.mrf.mxu1  ;;  %v5136_v24 = vadd.f32 %v5135_v12, %v5095_v27  ;;  %v5097_v31 = vadd.f32 %v5096_v13, %v3732_v28 }
 0x61c   : > { %v5098_v15 = vpop.f32.mrf.mxu0 }
 0x61d   : > { %v5139_v16 = vpop.f32.mrf.mxu1  ;;  %v5234_v33 = vsub.f32 %v6912_v29, %v5136_v24  ;;  %v5138_v52 = vadd.f32 %v5137_v14, %v5097_v31 }
 0x61e   : > { %v5099_v17 = vpop.f32.mrf.mxu0 }
 0x61f   : > { %v5140_v19 = vpop.f32.mrf.mxu1  ;;  %v5241_v30 = vmul.f32 %v8965_v40, %v5234_v33  ;;  %v5235_v36 = vsub.f32 %v6913_v35, %v5138_v52 }
 0x621   : > { %v5248_v46 = vmul.f32 %v5241_v30, %v5241_v30  ;;  %v5242_v51 = vmul.f32 %v8965_v40, %v5235_v36 }
 0x623   : > { %v5249_v57 = vmul.f32 %v5242_v51, %v5242_v51  ;;  %v5254_v58 = vadd.f32 %v5253_v10, %v5248_v46 }
 0x625   : > { %v5255_v49 = vadd.f32 %v5254_v58, %v5249_v57 }
 0x638   : > { %v5979_v9 = vpop.f32.mrf.mxu0 }
 0x639   : > { %v6001_v41 = vpop.f32.mrf.mxu1 }
 0x63a   : > { %v5980_v3 = vpop.f32.mrf.mxu0 }
 0x63b   : > { %v5981_v43 = vadd.f32 %v5980_v3, %v5979_v9  ;;  %v6002_v44 = vpop.f32.mrf.mxu1 }
 0x63c   : > { %v5982_v45 = vpop.f32.mrf.mxu0  ;;  %v6003_v48 = vadd.f32 %v6002_v44, %v6001_v41 }
 0x63d   : > { %v5177_v4 = vadd.f32 %v5981_v43, %v3736_v42  ;;  %v6004_v50 = vpop.f32.mrf.mxu1 }
 0x63e   : > { %v5983_v8 = vpop.f32.mrf.mxu0 }
 0x63f   : > { %v5217_v53 = vadd.f32 %v6003_v48, %v5177_v4  ;;  %v6005_v54 = vpop.f32.mrf.mxu1 }
 0x641   : > { %v5236_v56 = vsub.f32 %v6914_v55, %v5217_v53 }
 0x643   : > { %v5243_v26 = vmul.f32 %v8965_v40, %v5236_v56 }
 0x645   : > { %v5250_v59 = vmul.f32 %v5243_v26, %v5243_v26 }
 0x647   : > { %v5256_v60 = vadd.f32 %v5255_v49, %v5250_v59 }
 0x649   : > { %5257 = vadd.xlane.f32.xlu0 %v5256_v60 }
 0x6d2   : > { %v5258_v61 = vpop.xlane.xlu0 %5257 }
 0x6d3   : > { %v5259_v62 = vrot.slane %v5258_v61, 4 }
 0x6d5   : > { %v5260_v47 = vadd.f32 %v5259_v62, %v5258_v61 }
 0x6d7   : > { %v5261_v20 = vrot.slane %v5260_v47, 2 }
 0x6d9   : > { %v5262_v63 = vadd.f32 %v5261_v20, %v5260_v47 }
 0x6db   : > { %v5263_v25 = vrot.slane %v5262_v63, 1 }
 0x6dd   : > { %v5264_v0 = vadd.f32 %v5263_v25, %v5262_v63 }
 0x6df   : > { %6008 = vpush %v5264_v0 }
 0x710   : > { %s6009_s29 = spop %6008 }
 0x711   : > { %v5266_v32 = vstv %s6009_s29 }
 0x712   : > { %5267 = vst [vmem:[%s438_s28] sm:$0xff] %v5266_v32 }
 0x713 PF: > { %s23_s25 = sadd.s32 1, %s6921_s25  }
 0x714   : > { %p20_p4 = scmp.ge.s32.totalorder %s23_s25, 5  }
 0x716   :  { %22 = sbr.rel (!%p20_p4) target bundleno = 1 (0x1), region = 102 }

</bundles_post_ra>
